<compile_context>
chip_gen: v5e
topology: v5e:2x2
jax: 0.10.0
libtpu: 0.0.40
codegen_flags: <defaults>
</compile_context>

<pallas_src>
import functools

import jax
import jax.numpy as jnp
from jax.experimental import pallas as pl
from jax.experimental.pallas import tpu as pltpu


def _vgg_conv_kernel(x_ref, w_ref, b_ref, o_ref, *, wp, cp):
    # x_ref: (1, Lx, Cp)    f32   row-flattened, zero-padded image (one batch elem)
    # w_ref: (9, Cp, Cop)   bf16  per-tap weight slabs (tap-major)
    # b_ref: (1, Cop)       f32   bias (zero-padded to Cop lanes)
    # o_ref: (1, M, Cop)    f32   M = H*(W+2) output rows (2 junk cols per image row)
    m = o_ref.shape[1]
    cop = o_ref.shape[2]

    # Nine K=Cp MXU matmuls, accumulated in f32.  Tap (kh, kw) of the 3x3 window
    # is a contiguous row-slice of the flattened padded image at the constant
    # offset kh*Wp + kw — no per-tap reshape/relayout, channels stay lane-dense.
    acc = jnp.zeros((m, cop), dtype=jnp.float32)
    for kh in range(3):
        for kw in range(3):
            tap = kh * 3 + kw
            s = kh * wp + kw
            lhs = x_ref[0, s:s + m, :].astype(jnp.bfloat16)       # (M, Cp) bf16
            acc = acc + jnp.dot(lhs, w_ref[tap],
                                preferred_element_type=jnp.float32)

    acc = acc + b_ref[...]                    # f32 bias add on the VPU
    o_ref[0] = acc.astype(o_ref.dtype)        # dense 128-lane stores


def _round_up(x, m):
    return ((x + m - 1) // m) * m


def vgg_block_forward(x_nchw, weight, bias):
    """Equivalent of VGGBlock.forward (Conv2d 3x3, padding=1) for NCHW input.

    x_nchw : (N, Cin, H, W)    float32
    weight : (Cout, Cin, 3, 3) float32 (PyTorch OIHW layout)
    bias   : (Cout,)           float32
    returns: (N, Cout, H, W)   float32
    """
    N, Cin, H, W = x_nchw.shape
    Cout = weight.shape[0]

    LANES = 128
    Cp = _round_up(Cin, LANES)      # lane-dense input channels
    Cop = _round_up(Cout, LANES)    # lane-dense output channels
    Wp = W + 2                      # padded width
    M = H * Wp                      # output rows per image (incl. 2 junk cols/row)
    Lx = (H + 3) * Wp               # flattened padded rows; 1 extra zero row keeps
                                    # the last tap's slice in-bounds

    # ---- layout glue (XLA): NCHW -> NHWC, zero-pad spatial+channels, flatten ----
    x_nhwc = jnp.transpose(x_nchw, (0, 2, 3, 1))
    x_pad = jnp.pad(x_nhwc, ((0, 0), (1, 2), (1, 1), (0, Cp - Cin)))
    x_flat = x_pad.reshape(N, Lx, Cp)

    # Weights: (Cout, Cin, 3, 3) -> (3, 3, Cin, Cout) -> padded -> (9, Cp, Cop) bf16.
    w_hwio = jnp.transpose(weight, (2, 3, 1, 0))
    w_pad = jnp.pad(w_hwio, ((0, 0), (0, 0), (0, Cp - Cin), (0, Cop - Cout)))
    w_mat = w_pad.reshape(9, Cp, Cop).astype(jnp.bfloat16)

    b_pad = jnp.pad(bias, (0, Cop - Cout)).reshape(1, Cop).astype(jnp.float32)

    kernel = functools.partial(_vgg_conv_kernel, wp=Wp, cp=Cp)

    out_flat = pl.pallas_call(
        kernel,
        out_shape=jax.ShapeDtypeStruct((N, M, Cop), jnp.float32),
        grid=(N,),
        in_specs=[
            pl.BlockSpec((1, Lx, Cp), lambda n: (n, 0, 0)),
            pl.BlockSpec((9, Cp, Cop), lambda n: (0, 0, 0)),   # resident across steps
            pl.BlockSpec((1, Cop), lambda n: (0, 0)),
        ],
        out_specs=pl.BlockSpec((1, M, Cop), lambda n: (n, 0, 0)),
        compiler_params=pltpu.CompilerParams(
            dimension_semantics=("parallel",)),
    )(x_flat, w_mat, b_pad)

    # Drop the 2 junk columns per row, crop padded channels, back to NCHW.
    out = out_flat.reshape(N, H, Wp, Cop)[:, :, :W, :Cout]
    return jnp.transpose(out, (0, 3, 1, 2)).astype(x_nchw.dtype)


if __name__ == "__main__":
    key = jax.random.PRNGKey(0)
    N, Cin, Cout, H, W = 2, 4, 8, 16, 16

    kx, kw, kb = jax.random.split(key, 3)
    x = jax.random.normal(kx, (N, Cin, H, W), dtype=jnp.float32)
    # Deterministic parameter init (mimics Conv2d's uniform fan-in scaling).
    fan_in = Cin * 3 * 3
    bound = 1.0 / (fan_in ** 0.5)
    weight = jax.random.uniform(kw, (Cout, Cin, 3, 3),
                                minval=-bound, maxval=bound, dtype=jnp.float32)
    bias = jax.random.uniform(kb, (Cout,),
                              minval=-bound, maxval=bound, dtype=jnp.float32)

    out = vgg_block_forward(x, weight, bias)
    out = jax.block_until_ready(out)

    # Cross-check against XLA's conv (same semantics as nn.Conv2d, padding=1).
    ref = jax.lax.conv_general_dilated(
        x, weight, window_strides=(1, 1), padding=((1, 1), (1, 1)),
        dimension_numbers=("NCHW", "OIHW", "NCHW"),
    ) + bias.reshape(1, Cout, 1, 1)
    assert out.shape == (N, Cout, H, W)
    # bf16 MXU operands with f32 accumulation -> loosened tolerance vs f32 ref.
    max_err = float(jnp.max(jnp.abs(out - ref)))
    assert jnp.allclose(out, ref, atol=5e-2, rtol=5e-2), max_err

    print("KERNEL_OK")
</pallas_src>

<mosaic_0001>
module attributes {stable_mosaic.version = 11 : i64} {
  func.func @_vgg_conv_kernel(%arg0: i32, %arg1: memref<1x342x128xf32, #tpu.memory_space<vmem>>, %arg2: memref<9x128x128xbf16, #tpu.memory_space<vmem>>, %arg3: memref<1x128xf32, #tpu.memory_space<vmem>>, %arg4: memref<1x288x128xf32, #tpu.memory_space<vmem>>) attributes {dimension_semantics = [#tpu.dimension_semantics<parallel>], iteration_bounds = array<i64: 2>, scalar_prefetch = 0 : i64, scratch_operands = 0 : i64, tpu.core_type = #tpu.core_type<tc>, window_params = [{transform_indices = @transform_0, window_bounds = array<i64: 1, 342, 128>}, {pipeline_mode = #tpu.pipeline_mode<synchronous>, transform_indices = @transform_1, window_bounds = array<i64: 9, 128, 128>}, {pipeline_mode = #tpu.pipeline_mode<synchronous>, transform_indices = @transform_2, window_bounds = array<i64: 1, 128>}, {transform_indices = @transform_3, window_bounds = array<i64: 1, 288, 128>}]} {
    %cst = arith.constant 0.000000e+00 : f32
    %0 = vector.broadcast %cst : f32 to vector<288x128xf32>
    %c0 = arith.constant 0 : index
    %c0_0 = arith.constant 0 : index
    %c0_1 = arith.constant 0 : index
    %1 = vector.load %arg1[%c0, %c0_0, %c0_1] : memref<1x342x128xf32, #tpu.memory_space<vmem>>, vector<1x288x128xf32>
    %2 = vector.shape_cast %1 : vector<1x288x128xf32> to vector<288x128xf32>
    %3 = arith.truncf %2 : vector<288x128xf32> to vector<288x128xbf16>
    %c0_2 = arith.constant 0 : index
    %c0_3 = arith.constant 0 : index
    %c0_4 = arith.constant 0 : index
    %4 = vector.load %arg2[%c0_2, %c0_3, %c0_4] : memref<9x128x128xbf16, #tpu.memory_space<vmem>>, vector<1x128x128xbf16>
    %5 = vector.shape_cast %4 : vector<1x128x128xbf16> to vector<128x128xbf16>
    %cst_5 = arith.constant dense<0.000000e+00> : vector<288x128xf32>
    %6 = tpu.matmul %3, %5, %cst_5 {dimension_numbers = #tpu.dot_dimension_numbers<[1], [0], [0], [1], [0, 0, 1, 1], [], []>} : vector<288x128xbf16>, vector<128x128xbf16>, vector<288x128xf32> -> vector<288x128xf32>
    %7 = arith.addf %0, %6 : vector<288x128xf32>
    %c0_6 = arith.constant 0 : index
    %c1 = arith.constant 1 : index
    %c0_7 = arith.constant 0 : index
    %8 = vector.load %arg1[%c0_6, %c1, %c0_7] : memref<1x342x128xf32, #tpu.memory_space<vmem>>, vector<1x288x128xf32>
    %9 = vector.shape_cast %8 : vector<1x288x128xf32> to vector<288x128xf32>
    %10 = arith.truncf %9 : vector<288x128xf32> to vector<288x128xbf16>
    %c1_8 = arith.constant 1 : index
    %c0_9 = arith.constant 0 : index
    %c0_10 = arith.constant 0 : index
    %11 = vector.load %arg2[%c1_8, %c0_9, %c0_10] : memref<9x128x128xbf16, #tpu.memory_space<vmem>>, vector<1x128x128xbf16>
    %12 = vector.shape_cast %11 : vector<1x128x128xbf16> to vector<128x128xbf16>
    %cst_11 = arith.constant dense<0.000000e+00> : vector<288x128xf32>
    %13 = tpu.matmul %10, %12, %cst_11 {dimension_numbers = #tpu.dot_dimension_numbers<[1], [0], [0], [1], [0, 0, 1, 1], [], []>} : vector<288x128xbf16>, vector<128x128xbf16>, vector<288x128xf32> -> vector<288x128xf32>
    %14 = arith.addf %7, %13 : vector<288x128xf32>
    %c0_12 = arith.constant 0 : index
    %c2 = arith.constant 2 : index
    %c0_13 = arith.constant 0 : index
    %15 = vector.load %arg1[%c0_12, %c2, %c0_13] : memref<1x342x128xf32, #tpu.memory_space<vmem>>, vector<1x288x128xf32>
    %16 = vector.shape_cast %15 : vector<1x288x128xf32> to vector<288x128xf32>
    %17 = arith.truncf %16 : vector<288x128xf32> to vector<288x128xbf16>
    %c2_14 = arith.constant 2 : index
    %c0_15 = arith.constant 0 : index
    %c0_16 = arith.constant 0 : index
    %18 = vector.load %arg2[%c2_14, %c0_15, %c0_16] : memref<9x128x128xbf16, #tpu.memory_space<vmem>>, vector<1x128x128xbf16>
    %19 = vector.shape_cast %18 : vector<1x128x128xbf16> to vector<128x128xbf16>
    %cst_17 = arith.constant dense<0.000000e+00> : vector<288x128xf32>
    %20 = tpu.matmul %17, %19, %cst_17 {dimension_numbers = #tpu.dot_dimension_numbers<[1], [0], [0], [1], [0, 0, 1, 1], [], []>} : vector<288x128xbf16>, vector<128x128xbf16>, vector<288x128xf32> -> vector<288x128xf32>
    %21 = arith.addf %14, %20 : vector<288x128xf32>
    %c0_18 = arith.constant 0 : index
    %c18 = arith.constant 18 : index
    %c0_19 = arith.constant 0 : index
    %22 = vector.load %arg1[%c0_18, %c18, %c0_19] : memref<1x342x128xf32, #tpu.memory_space<vmem>>, vector<1x288x128xf32>
    %23 = vector.shape_cast %22 : vector<1x288x128xf32> to vector<288x128xf32>
    %24 = arith.truncf %23 : vector<288x128xf32> to vector<288x128xbf16>
    %c3 = arith.constant 3 : index
    %c0_20 = arith.constant 0 : index
    %c0_21 = arith.constant 0 : index
    %25 = vector.load %arg2[%c3, %c0_20, %c0_21] : memref<9x128x128xbf16, #tpu.memory_space<vmem>>, vector<1x128x128xbf16>
    %26 = vector.shape_cast %25 : vector<1x128x128xbf16> to vector<128x128xbf16>
    %cst_22 = arith.constant dense<0.000000e+00> : vector<288x128xf32>
    %27 = tpu.matmul %24, %26, %cst_22 {dimension_numbers = #tpu.dot_dimension_numbers<[1], [0], [0], [1], [0, 0, 1, 1], [], []>} : vector<288x128xbf16>, vector<128x128xbf16>, vector<288x128xf32> -> vector<288x128xf32>
    %28 = arith.addf %21, %27 : vector<288x128xf32>
    %c0_23 = arith.constant 0 : index
    %c19 = arith.constant 19 : index
    %c0_24 = arith.constant 0 : index
    %29 = vector.load %arg1[%c0_23, %c19, %c0_24] : memref<1x342x128xf32, #tpu.memory_space<vmem>>, vector<1x288x128xf32>
    %30 = vector.shape_cast %29 : vector<1x288x128xf32> to vector<288x128xf32>
    %31 = arith.truncf %30 : vector<288x128xf32> to vector<288x128xbf16>
    %c4 = arith.constant 4 : index
    %c0_25 = arith.constant 0 : index
    %c0_26 = arith.constant 0 : index
    %32 = vector.load %arg2[%c4, %c0_25, %c0_26] : memref<9x128x128xbf16, #tpu.memory_space<vmem>>, vector<1x128x128xbf16>
    %33 = vector.shape_cast %32 : vector<1x128x128xbf16> to vector<128x128xbf16>
    %cst_27 = arith.constant dense<0.000000e+00> : vector<288x128xf32>
    %34 = tpu.matmul %31, %33, %cst_27 {dimension_numbers = #tpu.dot_dimension_numbers<[1], [0], [0], [1], [0, 0, 1, 1], [], []>} : vector<288x128xbf16>, vector<128x128xbf16>, vector<288x128xf32> -> vector<288x128xf32>
    %35 = arith.addf %28, %34 : vector<288x128xf32>
    %c0_28 = arith.constant 0 : index
    %c20 = arith.constant 20 : index
    %c0_29 = arith.constant 0 : index
    %36 = vector.load %arg1[%c0_28, %c20, %c0_29] : memref<1x342x128xf32, #tpu.memory_space<vmem>>, vector<1x288x128xf32>
    %37 = vector.shape_cast %36 : vector<1x288x128xf32> to vector<288x128xf32>
    %38 = arith.truncf %37 : vector<288x128xf32> to vector<288x128xbf16>
    %c5 = arith.constant 5 : index
    %c0_30 = arith.constant 0 : index
    %c0_31 = arith.constant 0 : index
    %39 = vector.load %arg2[%c5, %c0_30, %c0_31] : memref<9x128x128xbf16, #tpu.memory_space<vmem>>, vector<1x128x128xbf16>
    %40 = vector.shape_cast %39 : vector<1x128x128xbf16> to vector<128x128xbf16>
    %cst_32 = arith.constant dense<0.000000e+00> : vector<288x128xf32>
    %41 = tpu.matmul %38, %40, %cst_32 {dimension_numbers = #tpu.dot_dimension_numbers<[1], [0], [0], [1], [0, 0, 1, 1], [], []>} : vector<288x128xbf16>, vector<128x128xbf16>, vector<288x128xf32> -> vector<288x128xf32>
    %42 = arith.addf %35, %41 : vector<288x128xf32>
    %c0_33 = arith.constant 0 : index
    %c36 = arith.constant 36 : index
    %c0_34 = arith.constant 0 : index
    %43 = vector.load %arg1[%c0_33, %c36, %c0_34] : memref<1x342x128xf32, #tpu.memory_space<vmem>>, vector<1x288x128xf32>
    %44 = vector.shape_cast %43 : vector<1x288x128xf32> to vector<288x128xf32>
    %45 = arith.truncf %44 : vector<288x128xf32> to vector<288x128xbf16>
    %c6 = arith.constant 6 : index
    %c0_35 = arith.constant 0 : index
    %c0_36 = arith.constant 0 : index
    %46 = vector.load %arg2[%c6, %c0_35, %c0_36] : memref<9x128x128xbf16, #tpu.memory_space<vmem>>, vector<1x128x128xbf16>
    %47 = vector.shape_cast %46 : vector<1x128x128xbf16> to vector<128x128xbf16>
    %cst_37 = arith.constant dense<0.000000e+00> : vector<288x128xf32>
    %48 = tpu.matmul %45, %47, %cst_37 {dimension_numbers = #tpu.dot_dimension_numbers<[1], [0], [0], [1], [0, 0, 1, 1], [], []>} : vector<288x128xbf16>, vector<128x128xbf16>, vector<288x128xf32> -> vector<288x128xf32>
    %49 = arith.addf %42, %48 : vector<288x128xf32>
    %c0_38 = arith.constant 0 : index
    %c37 = arith.constant 37 : index
    %c0_39 = arith.constant 0 : index
    %50 = vector.load %arg1[%c0_38, %c37, %c0_39] : memref<1x342x128xf32, #tpu.memory_space<vmem>>, vector<1x288x128xf32>
    %51 = vector.shape_cast %50 : vector<1x288x128xf32> to vector<288x128xf32>
    %52 = arith.truncf %51 : vector<288x128xf32> to vector<288x128xbf16>
    %c7 = arith.constant 7 : index
    %c0_40 = arith.constant 0 : index
    %c0_41 = arith.constant 0 : index
    %53 = vector.load %arg2[%c7, %c0_40, %c0_41] : memref<9x128x128xbf16, #tpu.memory_space<vmem>>, vector<1x128x128xbf16>
    %54 = vector.shape_cast %53 : vector<1x128x128xbf16> to vector<128x128xbf16>
    %cst_42 = arith.constant dense<0.000000e+00> : vector<288x128xf32>
    %55 = tpu.matmul %52, %54, %cst_42 {dimension_numbers = #tpu.dot_dimension_numbers<[1], [0], [0], [1], [0, 0, 1, 1], [], []>} : vector<288x128xbf16>, vector<128x128xbf16>, vector<288x128xf32> -> vector<288x128xf32>
    %56 = arith.addf %49, %55 : vector<288x128xf32>
    %c0_43 = arith.constant 0 : index
    %c38 = arith.constant 38 : index
    %c0_44 = arith.constant 0 : index
    %57 = vector.load %arg1[%c0_43, %c38, %c0_44] : memref<1x342x128xf32, #tpu.memory_space<vmem>>, vector<1x288x128xf32>
    %58 = vector.shape_cast %57 : vector<1x288x128xf32> to vector<288x128xf32>
    %59 = arith.truncf %58 : vector<288x128xf32> to vector<288x128xbf16>
    %c8 = arith.constant 8 : index
    %c0_45 = arith.constant 0 : index
    %c0_46 = arith.constant 0 : index
    %60 = vector.load %arg2[%c8, %c0_45, %c0_46] : memref<9x128x128xbf16, #tpu.memory_space<vmem>>, vector<1x128x128xbf16>
    %61 = vector.shape_cast %60 : vector<1x128x128xbf16> to vector<128x128xbf16>
    %cst_47 = arith.constant dense<0.000000e+00> : vector<288x128xf32>
    %62 = tpu.matmul %59, %61, %cst_47 {dimension_numbers = #tpu.dot_dimension_numbers<[1], [0], [0], [1], [0, 0, 1, 1], [], []>} : vector<288x128xbf16>, vector<128x128xbf16>, vector<288x128xf32> -> vector<288x128xf32>
    %63 = arith.addf %56, %62 : vector<288x128xf32>
    %c0_48 = arith.constant 0 : index
    %c0_49 = arith.constant 0 : index
    %64 = vector.load %arg3[%c0_48, %c0_49] : memref<1x128xf32, #tpu.memory_space<vmem>>, vector<1x128xf32>
    %65 = vector.broadcast %64 : vector<1x128xf32> to vector<288x128xf32>
    %66 = arith.addf %63, %65 : vector<288x128xf32>
    %c0_50 = arith.constant 0 : index
    %c0_51 = arith.constant 0 : index
    %c0_52 = arith.constant 0 : index
    %67 = vector.load %arg4[%c0_50, %c0_51, %c0_52] : memref<1x288x128xf32, #tpu.memory_space<vmem>>, vector<1x288x128xf32>
    %68 = vector.shape_cast %67 : vector<1x288x128xf32> to vector<288x128xf32>
    %69 = vector.shape_cast %66 : vector<288x128xf32> to vector<1x288x128xf32>
    tpu.vector_store %arg4[%c0_50, %c0_51, %c0_52], %69 {strides = array<i32>} : memref<1x288x128xf32, #tpu.memory_space<vmem>>, vector<1x288x128xf32>,
    return
  }
  func.func @transform_0(%arg0: i32) -> (i32, i32, i32) {
    %c0_i32 = arith.constant 0 : i32
    %c0_i32_0 = arith.constant 0 : i32
    %c0_i32_1 = arith.constant 0 : i32
    return %arg0, %c0_i32, %c0_i32_0 : i32, i32, i32
  }
  func.func @transform_1(%arg0: i32) -> (i32, i32, i32) {
    %c0_i32 = arith.constant 0 : i32
    %c0_i32_0 = arith.constant 0 : i32
    %c0_i32_1 = arith.constant 0 : i32
    %c0_i32_2 = arith.constant 0 : i32
    return %c0_i32, %c0_i32_0, %c0_i32_1 : i32, i32, i32
  }
  func.func @transform_2(%arg0: i32) -> (i32, i32) {
    %c0_i32 = arith.constant 0 : i32
    %c0_i32_0 = arith.constant 0 : i32
    %c0_i32_1 = arith.constant 0 : i32
    return %c0_i32, %c0_i32_0 : i32, i32
  }
  func.func @transform_3(%arg0: i32) -> (i32, i32, i32) {
    %c0_i32 = arith.constant 0 : i32
    %c0_i32_0 = arith.constant 0 : i32
    %c0_i32_1 = arith.constant 0 : i32
    return %arg0, %c0_i32, %c0_i32_0 : i32, i32, i32
  }
}

</mosaic_0001>

<bundles_post_ra>
// kernel: tpu_custom_call.1
= control target key start
LH: loop header
LB: loop body
LE: loop exit
PB: predicated region body
PF: predicated region fallthrough
CT: control target
= control target key end

     0   :  { %8 = vsyncpa [#allocation3], 0  ;;  %s4158_s0 = inlined_call_operand.vmem [shape: f32[2,342,128], index: 0, kind: input, shape index: {}]   ;;  %s4159_s1 = inlined_call_operand.vmem [shape: bf16[9,128,128], index: 1, kind: input, shape index: {}]   ;;  %s4160_s2 = inlined_call_operand.vmem [shape: f32[1,128], index: 2, kind: input, shape index: {}]   ;;  %s4161_s3 = inlined_call_operand.hbm [shape: f32[2,288,128], index: 3, kind: output, shape index: {}]  }
   0x1   :  { %10 = vsyncpa [#allocation3 + $0x1], 0  ;;  %s3187_s12 = smov 0   ;;  %s3189_s13 = smov 0  }
   0x2   :  { %s3191_s14 = smov 0   ;;  %s3193_s15 = smov 0  }
   0x3 LB: > { %s3208_s16 = sadd.s32 4294967295, %s3163_s15   ;;  %s2536_s17 = sadd.s32 4294967294, %s3163_s15   ;;  %s3163_s15 = sphi %s3193_s15, %s4167_s15   ;;  %s3159_s14 = sphi %s3191_s14, %s4166_s14   ;;  %s3155_s13 = sphi %s3189_s13, %s4165_s13   ;;  %s3151_s12 = sphi %s3187_s12, %s4164_s12  }
   0x4   : > { %s3212_s18 = sadd.s32 1, %s3163_s15   ;;  %s91_s19 = sadd.s32 1, %s3159_s14 }
   0x5   : > { %s88_s20 = ssub.s32 %s3163_s15, %s3212_s18  ;;  %p101_p0 = scmp.ne.s32.totalorder %s3159_s14, %s3155_s13 }
   0x6   : > { %p89_p1 = scmp.eq.s32.totalorder %s88_s20, 0  ;;  %p102_p2 = scmp.eq.s32.totalorder %s3208_s16, 1 }
   0x7   : > { %p107_p3 = scmp.ne.s32.totalorder %s3155_s13, %s3151_s12  ;;  %p108_p4 = scmp.eq.s32.totalorder %s2536_s17, 1 }
   0x8   : > { %s3223_s21 = scalar_select %p89_p1, %s3159_s14, %s91_s19  }
   0x9   : > { %p3225_p5 = por %p102_p2, %p101_p0  ;;  %p3229_p6 = por %p108_p4, %p107_p3 }
   0xa   : > { %p2539_p7 = scmp.ge.s32.totalorder %s3163_s15, 1  ;;  %p140_p8 = scmp.lt.s32.totalorder %s3163_s15, 3 }
   0xc   : > { %p141_p9 = pnand %p2539_p7, %p140_p8 }
   0xd   : > { %p164_p10 = scmp.lt.s32.totalorder (!%p141_p9), %s3208_s16, 1  ;;  %s161_s9 = sand.u32 (!%p141_p9), 1, %s3155_s13  }
   0xe   : > { %144 = sbr.rel (%p141_p9) target bundleno = 843 (0x34b), region = 32  ;;  %s3121_s6 = scalar_lea.hbm (!%p141_p9), %s4161_s3, 576 }
  0x13   : > { %v2975_v0 = vld [vmem:[%s4159_s1 + $0x78] sm:$0xff]  ;;  %v2974_v1 = vld [vmem:[%s4159_s1 + $0x70] sm:$0xff]  ;;  %v2973_v2 = vld [vmem:[%s4159_s1 + $0x68] sm:$0xff]  ;;  %s165_s7 = scalar_select %p164_p10, %s3208_s16, 1 }
  0x14   : > { %3032 = vmatpush.bf16.msra.mxu1 %v2975_v0  ;;  %3033 = vmatpush.bf16.msra.mxu2 %v2975_v0  ;;  %v2972_v3 = vld [vmem:[%s4159_s1 + $0x60] sm:$0xff]  ;;  %v2971_v4 = vld [vmem:[%s4159_s1 + $0x58] sm:$0xff]  ;;  %v2970_v5 = vld [vmem:[%s4159_s1 + $0x50] sm:$0xff] }
  0x15   : > { %358 = vmatpush.bf16.msra.mxu0 %v2975_v0  ;;  %3034 = vmatpush.bf16.msra.mxu3 %v2975_v0  ;;  %s3057_s10 = smul.u32 344, %s165_s7  ;;  %v2969_v6 = vld [vmem:[%s4159_s1 + $0x48] sm:$0xff]  ;;  %v2968_v7 = vld [vmem:[%s4159_s1 + $0x40] sm:$0xff]  ;;  %v2983_v12 = vld [vmem:[%s4159_s1 + $0xb8] sm:$0xff] }
  0x16   : > { %v2967_v15 = vld [vmem:[%s4159_s1 + $0x38] sm:$0xff]  ;;  %v2982_v22 = vld [vmem:[%s4159_s1 + $0xb0] sm:$0xff]  ;;  %v2981_v27 = vld [vmem:[%s4159_s1 + $0xa8] sm:$0xff] }
  0x17   : > { %s3261_s24 = scalar_lea.vmem %s4158_s0, %s3057_s10  ;;  %v2999_v16 = vld [vmem:[%s4159_s1 + $0x138] sm:$0xff]  ;;  %v2966_v23 = vld [vmem:[%s4159_s1 + $0x30] sm:$0xff]  ;;  %v2965_v28 = vld [vmem:[%s4159_s1 + $0x28] sm:$0xff]  ;;  %s3056_s10 = smul.u32 288, %s161_s9 }
  0x18   : > { %3035 = vmatpush.bf16.msra.mxu1 %v2974_v1  ;;  %3036 = vmatpush.bf16.msra.mxu2 %v2974_v1  ;;  %v249_v8 = vld [vmem:[%s3261_s24 + $0x51] sm:$0xff]  ;;  %v250_v9 = vld [vmem:[%s3261_s24 + $0x59] sm:$0xff]  ;;  %v259_v10 = vld [vmem:[%s3261_s24 + $0xa1] sm:$0xff] }
  0x19   : > { %359 = vmatpush.bf16.msra.mxu0 %v2974_v1  ;;  %3037 = vmatpush.bf16.msra.mxu3 %v2974_v1  ;;  %v260_v11 = vld [vmem:[%s3261_s24 + $0xa9] sm:$0xff]  ;;  %v239_v13 = vld [vmem:[%s3261_s24 + $0x1] sm:$0xff]  ;;  %v280_v17 = vpack.c.bf16 %v250_v9, %v249_v8  ;;  %v269_v20 = vld [vmem:[%s3261_s24 + $0xf1] sm:$0xff]  ;;  %s3938_s19 = scalar_lea.vmem [#allocation2], %s3056_s10 }
  0x1a   : > { %v240_v14 = vld [vmem:[%s3261_s24 + $0x9] sm:$0xff]  ;;  %v285_v18 = vpack.c.bf16 %v260_v11, %v259_v10  ;;  %v270_v21 = vld [vmem:[%s3261_s24 + $0xf9] sm:$0xff]  ;;  %v251_v34 = vld [vmem:[%s3261_s24 + $0x61] sm:$0xff]  ;;  %s2471_s27 = sshll.u32 %s3938_s19, 4  ;;  %s2472_s27 = int_to_ptr.vmem [resolvable:$true] %s2471_s27 }
  0x1b   : > { %v275_v19 = vpack.c.bf16 %v240_v14, %v239_v13  ;;  %v2998_v24 = vld [vmem:[%s4159_s1 + $0x130] sm:$0xff]  ;;  %v290_v25 = vpack.c.bf16 %v270_v21, %v269_v20  ;;  %v2991_v26 = vld [vmem:[%s4159_s1 + $0xf8] sm:$0xff]  ;;  %v2997_v29 = vld [vmem:[%s4159_s1 + $0x128] sm:$0xff] }
  0x1c   : > { %3038 = vmatpush.bf16.msra.mxu1 %v2973_v2  ;;  %3039 = vmatpush.bf16.msra.mxu2 %v2973_v2  ;;  %v2990_v30 = vld [vmem:[%s4159_s1 + $0xf0] sm:$0xff]  ;;  %v2980_v31 = vld [vmem:[%s4159_s1 + $0xa0] sm:$0xff]  ;;  %v2989_v38 = vld [vmem:[%s4159_s1 + $0xe8] sm:$0xff] }
  0x1d   : > { %360 = vmatpush.bf16.msra.mxu0 %v2973_v2  ;;  %3040 = vmatpush.bf16.msra.mxu3 %v2973_v2  ;;  %v2964_v32 = vld [vmem:[%s4159_s1 + $0x20] sm:$0xff]  ;;  %v252_v35 = vld [vmem:[%s3261_s24 + $0x69] sm:$0xff]  ;;  %v261_v36 = vld [vmem:[%s3261_s24 + $0xb1] sm:$0xff] }
  0x1e   : > { %v2996_v33 = vld [vmem:[%s4159_s1 + $0x120] sm:$0xff]  ;;  %v241_v39 = vld [vmem:[%s3261_s24 + $0x11] sm:$0xff]  ;;  %v281_v43 = vpack.c.bf16 %v252_v35, %v251_v34  ;;  %v272_v47 = vld [vmem:[%s3261_s24 + $0x109] sm:$0xff] }
  0x1f   : > { %v262_v37 = vld [vmem:[%s3261_s24 + $0xb9] sm:$0xff]  ;;  %v271_v46 = vld [vmem:[%s3261_s24 + $0x101] sm:$0xff]  ;;  %v2978_v49 = vld [vmem:[%s4159_s1 + $0x90] sm:$0xff] }
  0x20   : > { %3041 = vmatpush.bf16.msra.mxu1 %v2972_v3  ;;  %3042 = vmatpush.bf16.msra.mxu2 %v2972_v3  ;;  %v242_v40 = vld [vmem:[%s3261_s24 + $0x19] sm:$0xff]  ;;  %v286_v44 = vpack.c.bf16 %v262_v37, %v261_v36  ;;  %v291_v48 = vpack.c.bf16 %v272_v47, %v271_v46  ;;  %v2962_v52 = vld [vmem:[%s4159_s1 + $0x10] sm:$0xff]  ;;  %v2977_v53 = vld [vmem:[%s4159_s1 + $0x88] sm:$0xff] }
  0x21   : > { %361 = vmatpush.bf16.msra.mxu0 %v2972_v3  ;;  %3043 = vmatpush.bf16.msra.mxu3 %v2972_v3  ;;  %v2979_v41 = vld [vmem:[%s4159_s1 + $0x98] sm:$0xff]  ;;  %v276_v45 = vpack.c.bf16 %v242_v40, %v241_v39  ;;  %v2988_v51 = vld [vmem:[%s4159_s1 + $0xe0] sm:$0xff]  ;;  %v2994_v54 = vld [vmem:[%s4159_s1 + $0x110] sm:$0xff] }
  0x22   : > { %v2963_v42 = vld [vmem:[%s4159_s1 + $0x18] sm:$0xff]  ;;  %v263_v58 = vld [vmem:[%s3261_s24 + $0xc1] sm:$0xff]  ;;  %v264_v59 = vld [vmem:[%s3261_s24 + $0xc9] sm:$0xff] }
  0x23   : > { %v2995_v50 = vld [vmem:[%s4159_s1 + $0x118] sm:$0xff]  ;;  %v2986_v60 = vld [vmem:[%s4159_s1 + $0xd0] sm:$0xff]  ;;  %v243_v61 = vld [vmem:[%s3261_s24 + $0x21] sm:$0xff]  ;;  %v287_v0 = vpack.c.bf16 %v264_v59, %v263_v58 }
  0x24   : > { %3044 = vmatpush.bf16.msra.mxu1 %v2971_v4  ;;  %3045 = vmatpush.bf16.msra.mxu2 %v2971_v4  ;;  %v2987_v55 = vld [vmem:[%s4159_s1 + $0xd8] sm:$0xff]  ;;  %v244_v62 = vld [vmem:[%s3261_s24 + $0x29] sm:$0xff]  ;;  %v2960_v9 = vld [vmem:[%s4159_s1] sm:$0xff] }
  0x25   : > { %362 = vmatpush.bf16.msra.mxu0 %v2971_v4  ;;  %3046 = vmatpush.bf16.msra.mxu3 %v2971_v4  ;;  %v253_v56 = vld [vmem:[%s3261_s24 + $0x71] sm:$0xff]  ;;  %v254_v57 = vld [vmem:[%s3261_s24 + $0x79] sm:$0xff]  ;;  %v277_v1 = vpack.c.bf16 %v244_v62, %v243_v61  ;;  %v2993_v8 = vld [vmem:[%s4159_s1 + $0x108] sm:$0xff] }
  0x26   : > { %v282_v63 = vpack.c.bf16 %v254_v57, %v253_v56  ;;  %v273_v2 = vld [vmem:[%s3261_s24 + $0x111] sm:$0xff]  ;;  %v274_v3 = vld [vmem:[%s3261_s24 + $0x119] sm:$0xff]  ;;  %v256_v13 = vld [vmem:[%s3261_s24 + $0x89] sm:$0xff] }
  0x27   : > { %v292_v4 = vpack.c.bf16 %v274_v3, %v273_v2  ;;  %v2984_v10 = vld [vmem:[%s4159_s1 + $0xc0] sm:$0xff]  ;;  %v265_v14 = vld [vmem:[%s3261_s24 + $0xd1] sm:$0xff]  ;;  %v174_v2 = vld [vmem:[%s3261_s24 + $0x28] sm:$0xff] }
  0x28   : > { %3047 = vmatpush.bf16.msra.mxu1 %v2970_v5  ;;  %3048 = vmatpush.bf16.msra.mxu2 %v2970_v5  ;;  %v2992_v11 = vld [vmem:[%s4159_s1 + $0x100] sm:$0xff]  ;;  %v858_v21 = vld [vmem:[%s3261_s24 + $0x12] sm:$0xff]  ;;  %v865_v62 = vld [vmem:[%s3261_s24 + $0x4a] sm:$0xff] }
  0x29   : > { %363 = vmatpush.bf16.msra.mxu0 %v2970_v5  ;;  %3049 = vmatpush.bf16.msra.mxu3 %v2970_v5  ;;  %v2961_v5 = vld [vmem:[%s4159_s1 + $0x8] sm:$0xff]  ;;  %v169_v40 = vld [vmem:[%s3261_s24] sm:$0xff]  ;;  %v172_v56 = vld [vmem:[%s3261_s24 + $0x18] sm:$0xff] }
  0x2a   : > { %v860_v37 = vld [vmem:[%s3261_s24 + $0x22] sm:$0xff]  ;;  %v1115_v58 = vld [vmem:[%s3261_s24 + $0x2b] sm:$0xff]  ;;  %v1116_v3 = vld [vmem:[%s3261_s24 + $0x33] sm:$0xff] }
  0x2b   : > { %v1114_v57 = vld [vmem:[%s3261_s24 + $0x23] sm:$0xff] }
  0x2c   : > { %3050 = vmatpush.bf16.msra.mxu1 %v2969_v6  ;;  %3051 = vmatpush.bf16.msra.mxu2 %v2969_v6  ;;  %v864_v61 = vld [vmem:[%s3261_s24 + $0x42] sm:$0xff] }
  0x2d   : > { %364 = vmatpush.bf16.msra.mxu0 %v2969_v6  ;;  %3052 = vmatpush.bf16.msra.mxu3 %v2969_v6  ;;  %v2985_v6 = vld [vmem:[%s4159_s1 + $0xc8] sm:$0xff] }
  0x30   : > { %3053 = vmatpush.bf16.msra.mxu1 %v2968_v7  ;;  %3054 = vmatpush.bf16.msra.mxu2 %v2968_v7 }
  0x31   : > { %365 = vmatpush.bf16.msra.mxu0 %v2968_v7  ;;  %3055 = vmatpush.bf16.msra.mxu3 %v2968_v7  ;;  %v2976_v7 = vld [vmem:[%s4159_s1 + $0x80] sm:$0xff] }
  0x33   : > { %391 = vmatmul.bf16.vlgmr.msra.gmra.mxu1 %v280_v17  ;;  %416 = vmatmul.bf16.vlgmr.msra.gmra.mxu2 %v285_v18  ;;  %v246_v17 = vld [vmem:[%s3261_s24 + $0x39] sm:$0xff] }
  0x34   : > { %723 = vmatpush.bf16.msrb.mxu2 %v2983_v12  ;;  %505 = vmatpush.bf16.msrb.mxu1 %v2967_v15  ;;  %v255_v12 = vld [vmem:[%s3261_s24 + $0x81] sm:$0xff]  ;;  %v266_v15 = vld [vmem:[%s3261_s24 + $0xd9] sm:$0xff] }
  0x35   : > { %1231 = vmatpush.bf16.msrb.mxu0 %v2999_v16  ;;  %441 = vmatmul.bf16.vlgmr.msra.gmra.mxu3 %v290_v25  ;;  %v245_v16 = vld [vmem:[%s3261_s24 + $0x31] sm:$0xff]  ;;  %v283_v18 = vpack.c.bf16 %v256_v13, %v255_v12 }
  0x36   : > { %366 = vmatmul.bf16.vlgmr.msra.gmra.mxu0 %v275_v19  ;;  %977 = vmatpush.bf16.msrb.mxu3 %v2991_v26  ;;  %v288_v19 = vpack.c.bf16 %v266_v15, %v265_v14  ;;  %v278_v20 = vpack.c.bf16 %v246_v17, %v245_v16  ;;  %v3023_v25 = vld [vmem:[%s4159_s1 + $0x1f8] sm:$0xff]  ;;  %v175_v12 = vld [vmem:[%s3261_s24 + $0x30] sm:$0xff]  ;;  %v1118_v14 = vld [vmem:[%s3261_s24 + $0x43] sm:$0xff] }
  0x37   : > { %v3007_v26 = vld [vmem:[%s4159_s1 + $0x178] sm:$0xff]  ;;  %v1119_v15 = vld [vmem:[%s3261_s24 + $0x4b] sm:$0xff] }
  0x38   : > { %724 = vmatpush.bf16.msrb.mxu2 %v2982_v22  ;;  %506 = vmatpush.bf16.msrb.mxu1 %v2966_v23  ;;  %v859_v22 = vld [vmem:[%s3261_s24 + $0x1a] sm:$0xff]  ;;  %v3005_v16 = vld [vmem:[%s4159_s1 + $0x168] sm:$0xff] }
  0x39   : > { %1232 = vmatpush.bf16.msrb.mxu0 %v2998_v24  ;;  %v894_v23 = vpack.c.bf16 %v859_v22, %v858_v21  ;;  %v3015_v24 = vld [vmem:[%s4159_s1 + $0x1b8] sm:$0xff]  ;;  %v869_v21 = vld [vmem:[%s3261_s24 + $0x6a] sm:$0xff] }
  0x3a   : > { %978 = vmatpush.bf16.msrb.mxu3 %v2990_v30  ;;  %v267_v30 = vld [vmem:[%s3261_s24 + $0xe1] sm:$0xff]  ;;  %v176_v13 = vld [vmem:[%s3261_s24 + $0x38] sm:$0xff] }
  0x3b   : > { %v208_v17 = vpack.c.bf16 %v176_v13, %v175_v12  ;;  %v875_v12 = vld [vmem:[%s3261_s24 + $0x9a] sm:$0xff] }
  0x3c   : > { %725 = vmatpush.bf16.msrb.mxu2 %v2981_v27  ;;  %507 = vmatpush.bf16.msrb.mxu1 %v2965_v28  ;;  %v3031_v27 = vld [vmem:[%s4159_s1 + $0x238] sm:$0xff] }
  0x3d   : > { %1233 = vmatpush.bf16.msrb.mxu0 %v2997_v29  ;;  %v257_v28 = vld [vmem:[%s3261_s24 + $0x91] sm:$0xff]  ;;  %v258_v29 = vld [vmem:[%s3261_s24 + $0x99] sm:$0xff] }
  0x3e   : > { %979 = vmatpush.bf16.msrb.mxu3 %v2989_v38  ;;  %v284_v34 = vpack.c.bf16 %v258_v29, %v257_v28  ;;  %v861_v38 = vld [vmem:[%s3261_s24 + $0x2a] sm:$0xff]  ;;  %v177_v29 = vld [vmem:[%s3261_s24 + $0x40] sm:$0xff] }
  0x3f   : > { %v895_v39 = vpack.c.bf16 %v861_v38, %v860_v37  ;;  %v870_v37 = vld [vmem:[%s3261_s24 + $0x72] sm:$0xff]  ;;  %v871_v38 = vld [vmem:[%s3261_s24 + $0x7a] sm:$0xff] }
  0x40   : > { %726 = vmatpush.bf16.msrb.mxu2 %v2980_v31  ;;  %508 = vmatpush.bf16.msrb.mxu1 %v2964_v32  ;;  %v268_v31 = vld [vmem:[%s3261_s24 + $0xe9] sm:$0xff]  ;;  %v247_v32 = vld [vmem:[%s3261_s24 + $0x41] sm:$0xff] }
  0x41   : > { %1234 = vmatpush.bf16.msrb.mxu0 %v2996_v33  ;;  %v248_v33 = vld [vmem:[%s3261_s24 + $0x49] sm:$0xff]  ;;  %v289_v35 = vpack.c.bf16 %v268_v31, %v267_v30  ;;  %v1120_v31 = vld [vmem:[%s3261_s24 + $0x53] sm:$0xff] }
  0x42   : > { %980 = vmatpush.bf16.msrb.mxu3 %v2988_v51  ;;  %v279_v36 = vpack.c.bf16 %v248_v33, %v247_v32  ;;  %v178_v30 = vld [vmem:[%s3261_s24 + $0x48] sm:$0xff]  ;;  %v1121_v32 = vld [vmem:[%s3261_s24 + $0x5b] sm:$0xff] }
  0x43   : > { %396 = vmatmul.bf16.gmra.mxu1 %v281_v43  ;;  %421 = vmatmul.bf16.gmra.mxu2 %v286_v44  ;;  %v605_v43 = vld [vmem:[%s3261_s24 + $0xa] sm:$0xff]  ;;  %v1112_v44 = vld [vmem:[%s3261_s24 + $0x13] sm:$0xff] }
  0x44   : > { %727 = vmatpush.bf16.msrb.mxu2 %v2979_v41  ;;  %509 = vmatpush.bf16.msrb.mxu1 %v2963_v42  ;;  %v170_v41 = vld [vmem:[%s3261_s24 + $0x8] sm:$0xff] }
  0x45   : > { %1235 = vmatpush.bf16.msrb.mxu0 %v2995_v50  ;;  %446 = vmatmul.bf16.gmra.mxu3 %v291_v48  ;;  %v604_v42 = vld [vmem:[%s3261_s24 + $0x2] sm:$0xff]  ;;  %v205_v46 = vpack.c.bf16 %v170_v41, %v169_v40  ;;  %v863_v50 = vld [vmem:[%s3261_s24 + $0x3a] sm:$0xff]  ;;  %v3496_v41 = vpack.c.bf16 %v871_v38, %v870_v37  ;;  %v877_v37 = vld [vmem:[%s3261_s24 + $0xaa] sm:$0xff] }
  0x46   : > { %371 = vmatmul.bf16.gmra.mxu0 %v276_v45  ;;  %981 = vmatpush.bf16.msrb.mxu3 %v2987_v55  ;;  %v1113_v45 = vld [vmem:[%s3261_s24 + $0x1b] sm:$0xff]  ;;  %v640_v47 = vpack.c.bf16 %v605_v43, %v604_v42  ;;  %v171_v55 = vld [vmem:[%s3261_s24 + $0x10] sm:$0xff] }
  0x47   : > { %v1148_v48 = vpack.c.bf16 %v1113_v45, %v1112_v44  ;;  %v206_v59 = vpack.c.bf16 %v172_v56, %v171_v55  ;;  %v872_v55 = vld [vmem:[%s3261_s24 + $0x82] sm:$0xff]  ;;  %v873_v56 = vld [vmem:[%s3261_s24 + $0x8a] sm:$0xff] }
  0x48   : > { %728 = vmatpush.bf16.msrb.mxu2 %v2978_v49  ;;  %510 = vmatpush.bf16.msrb.mxu1 %v2962_v52  ;;  %v862_v49 = vld [vmem:[%s3261_s24 + $0x32] sm:$0xff] }
  0x49   : > { %1236 = vmatpush.bf16.msrb.mxu0 %v2994_v54  ;;  %v896_v51 = vpack.c.bf16 %v863_v50, %v862_v49  ;;  %v3014_v52 = vld [vmem:[%s4159_s1 + $0x1b0] sm:$0xff] }
  0x4a   : > { %982 = vmatpush.bf16.msrb.mxu3 %v2986_v60  ;;  %v3006_v54 = vld [vmem:[%s4159_s1 + $0x170] sm:$0xff]  ;;  %v1149_v60 = vpack.c.bf16 %v1115_v58, %v1114_v57  ;;  %v3020_v57 = vld [vmem:[%s4159_s1 + $0x1e0] sm:$0xff] }
  0x4b   : > { %v1123_v49 = vld [vmem:[%s3261_s24 + $0x6b] sm:$0xff] }
  0x4c   : > { %729 = vmatpush.bf16.msrb.mxu2 %v2977_v53  ;;  %511 = vmatpush.bf16.msrb.mxu1 %v2961_v5  ;;  %v3022_v53 = vld [vmem:[%s4159_s1 + $0x1f0] sm:$0xff] }
  0x4d   : > { %1237 = vmatpush.bf16.msrb.mxu0 %v2993_v8  ;;  %v867_v8 = vld [vmem:[%s3261_s24 + $0x5a] sm:$0xff] }
  0x4e   : > { %983 = vmatpush.bf16.msrb.mxu3 %v2985_v6 }
  0x50   : > { %730 = vmatpush.bf16.msrb.mxu2 %v2976_v7  ;;  %512 = vmatpush.bf16.msrb.mxu1 %v2960_v9  ;;  %v866_v7 = vld [vmem:[%s3261_s24 + $0x52] sm:$0xff] }
  0x51   : > { %1238 = vmatpush.bf16.msrb.mxu0 %v2992_v11  ;;  %v3446_v9 = vpack.c.bf16 %v867_v8, %v866_v7  ;;  %v3021_v11 = vld [vmem:[%s4159_s1 + $0x1e8] sm:$0xff] }
  0x52   : > { %984 = vmatpush.bf16.msrb.mxu3 %v2984_v10  ;;  %v3013_v10 = vld [vmem:[%s4159_s1 + $0x1a8] sm:$0xff] }
  0x53   : > { %401 = vmatmul.bf16.gmra.mxu1 %v282_v63  ;;  %426 = vmatmul.bf16.gmra.mxu2 %v287_v0  ;;  %v3030_v63 = vld [vmem:[%s4159_s1 + $0x230] sm:$0xff]  ;;  %v897_v0 = vpack.c.bf16 %v865_v62, %v864_v61  ;;  %v3004_v61 = vld [vmem:[%s4159_s1 + $0x160] sm:$0xff] }
  0x54   : > { %1739 = vmatpush.bf16.msra.mxu2 %v3015_v24  ;;  %1485 = vmatpush.bf16.msra.mxu1 %v3007_v26  ;;  %v3029_v24 = vld [vmem:[%s4159_s1 + $0x228] sm:$0xff] }
  0x55   : > { %451 = vmatmul.bf16.gmra.mxu3 %v292_v4  ;;  %2247 = vmatpush.bf16.msra.mxu0 %v3031_v27  ;;  %v1117_v4 = vld [vmem:[%s3261_s24 + $0x3b] sm:$0xff] }
  0x56   : > { %376 = vmatmul.bf16.gmra.mxu0 %v277_v1  ;;  %1993 = vmatpush.bf16.msra.mxu3 %v3023_v25  ;;  %v173_v1 = vld [vmem:[%s3261_s24 + $0x20] sm:$0xff]  ;;  %v1150_v6 = vpack.c.bf16 %v1117_v4, %v1116_v3  ;;  %v182_v4 = vld [vmem:[%s3261_s24 + $0x68] sm:$0xff] }
  0x57   : > { %v207_v5 = vpack.c.bf16 %v174_v2, %v173_v1  ;;  %v181_v3 = vld [vmem:[%s3261_s24 + $0x60] sm:$0xff] }
  0x58   : > { %1740 = vmatpush.bf16.msra.mxu2 %v3014_v52  ;;  %1486 = vmatpush.bf16.msra.mxu1 %v3006_v54  ;;  %v211_v8 = vpack.c.bf16 %v182_v4, %v181_v3  ;;  %v1129_v3 = vld [vmem:[%s3261_s24 + $0x9b] sm:$0xff] }
  0x59   : > { %2248 = vmatpush.bf16.msra.mxu0 %v3030_v63 }
  0x5a   : > { %1994 = vmatpush.bf16.msra.mxu3 %v3022_v53 }
  0x5c   : > { %1741 = vmatpush.bf16.msra.mxu2 %v3013_v10  ;;  %1487 = vmatpush.bf16.msra.mxu1 %v3005_v16 }
  0x5d   : > { %2249 = vmatpush.bf16.msra.mxu0 %v3029_v24  ;;  %v184_v24 = vld [vmem:[%s3261_s24 + $0x78] sm:$0xff] }
  0x5e   : > { %1995 = vmatpush.bf16.msra.mxu3 %v3021_v11  ;;  %v874_v11 = vld [vmem:[%s3261_s24 + $0x92] sm:$0xff] }
  0x60   : > { %1488 = vmatpush.bf16.msra.mxu1 %v3004_v61  ;;  %v186_v61 = vld [vmem:[%s3261_s24 + $0x88] sm:$0xff] }
  0x62   : > { %1996 = vmatpush.bf16.msra.mxu3 %v3020_v57  ;;  %v185_v57 = vld [vmem:[%s3261_s24 + $0x80] sm:$0xff] }
  0x63   : > { %406 = vmatmul.bf16.gmra.mxu1 %v283_v18  ;;  %431 = vmatmul.bf16.gmra.mxu2 %v288_v19  ;;  %v1151_v19 = vpack.c.bf16 %v1119_v15, %v1118_v14  ;;  %v3560_v15 = vpack.c.bf16 %v875_v12, %v874_v11  ;;  %v879_v11 = vld [vmem:[%s3261_s24 + $0xba] sm:$0xff] }
  0x65   : > { %985 = vmatmul.bf16.vlgmr.msrb.gmra.mxu3 %v894_v23 }
  0x66   : > { %381 = vmatmul.bf16.gmra.mxu0 %v278_v20  ;;  %v868_v20 = vld [vmem:[%s3261_s24 + $0x62] sm:$0xff] }
  0x73   : > { %411 = vmatmul.bf16.gmra.mxu1 %v284_v34  ;;  %436 = vmatmul.bf16.gmra.mxu2 %v289_v35  ;;  %v209_v34 = vpack.c.bf16 %v178_v30, %v177_v29  ;;  %v1126_v29 = vld [vmem:[%s3261_s24 + $0x83] sm:$0xff]  ;;  %v1127_v30 = vld [vmem:[%s3261_s24 + $0x8b] sm:$0xff] }
  0x75   : > { %990 = vmatmul.bf16.gmra.mxu3 %v895_v39 }
  0x76   : > { %386 = vmatmul.bf16.gmra.mxu0 %v279_v36  ;;  %v1152_v36 = vpack.c.bf16 %v1121_v32, %v1120_v31 }
  0x83   : > { %513 = vmatmul.bf16.vlgmr.msrb.gmra.mxu1 %v205_v46  ;;  %731 = vmatmul.bf16.vlgmr.msrb.gmra.mxu2 %v640_v47  ;;  %v179_v46 = vld [vmem:[%s3261_s24 + $0x50] sm:$0xff]  ;;  %v180_v47 = vld [vmem:[%s3261_s24 + $0x58] sm:$0xff] }
  0x84   : > { %v210_v52 = vpack.c.bf16 %v180_v47, %v179_v46 }
  0x85   : > { %995 = vmatmul.bf16.gmra.mxu3 %v896_v51 }
  0x86   : > { %1239 = vmatmul.bf16.vlgmr.msrb.gmra.mxu0 %v1148_v48  ;;  %v1122_v48 = vld [vmem:[%s3261_s24 + $0x63] sm:$0xff] }
  0x87   : > { %v1153_v54 = vpack.c.bf16 %v1123_v49, %v1122_v48  ;;  %v3011_v48 = vld [vmem:[%s4159_s1 + $0x198] sm:$0xff] }
  0x88   : > { %v3019_v49 = vld [vmem:[%s4159_s1 + $0x1d8] sm:$0xff] }
  0x89   : > { %1997 = vmatpush.bf16.msra.mxu3 %v3019_v49 }
  0x93   : > { %518 = vmatmul.bf16.gmra.mxu1 %v206_v59  ;;  %736 = vmatmul.bf16.gmra.mxu2 %v894_v23  ;;  %v3468_v23 = vpack.c.bf16 %v869_v21, %v868_v20  ;;  %v183_v21 = vld [vmem:[%s3261_s24 + $0x70] sm:$0xff] }
  0x95   : > { %1000 = vmatmul.bf16.gmra.mxu3 %v897_v0 }
  0x96   : > { %1244 = vmatmul.bf16.gmra.mxu0 %v1149_v60  ;;  %v3528_v60 = vpack.c.bf16 %v873_v56, %v872_v55  ;;  %v3027_v56 = vld [vmem:[%s4159_s1 + $0x218] sm:$0xff] }
  0xa3   : > { %523 = vmatmul.bf16.gmra.mxu1 %v207_v5  ;;  %741 = vmatmul.bf16.gmra.mxu2 %v895_v39  ;;  %v1124_v5 = vld [vmem:[%s3261_s24 + $0x73] sm:$0xff] }
  0xa5   : > { %1005 = vmatmul.bf16.gmra.mxu3 %v3446_v9 }
  0xa6   : > { %1249 = vmatmul.bf16.gmra.mxu0 %v1150_v6  ;;  %v1125_v6 = vld [vmem:[%s3261_s24 + $0x7b] sm:$0xff] }
  0xa7   : > { %v1154_v10 = vpack.c.bf16 %v1125_v6, %v1124_v5  ;;  %v213_v5 = vpack.c.bf16 %v186_v61, %v185_v57  ;;  %v1130_v57 = vld [vmem:[%s3261_s24 + $0xa3] sm:$0xff]  ;;  %v1131_v61 = vld [vmem:[%s3261_s24 + $0xab] sm:$0xff] }
  0xb0   : > { %v3462_v18 = vpop.f32.mrf.mxu1 }
  0xb3   : > { %v3466_v22 = vpop.f32.mrf.mxu0  ;;  %528 = vmatmul.bf16.gmra.mxu1 %v208_v17  ;;  %746 = vmatmul.bf16.gmra.mxu2 %v896_v51  ;;  %v3012_v51 = vld [vmem:[%s4159_s1 + $0x1a0] sm:$0xff] }
  0xb4   : > { %1742 = vmatpush.bf16.msra.mxu2 %v3012_v51 }
  0xb5   : > { %1010 = vmatmul.bf16.gmra.mxu3 %v3468_v23 }
  0xb6   : > { %1254 = vmatmul.bf16.gmra.mxu0 %v1151_v19  ;;  %v3473_v25 = vpop.f32.mrf.mxu2 }
  0xb8   : > { %v3476_v26 = vpop.f32.mrf.mxu1  ;;  %v3480_v28 = vpop.f32.mrf.mxu3  ;;  %1743 = vmatpush.bf16.msra.mxu2 %v3011_v48 }
  0xbb   : > { %v3478_v27 = vpop.f32.mrf.mxu0 }
  0xbe   : > { %v3486_v33 = vpop.f32.mrf.mxu2 }
  0xc0   : > { %v3488_v35 = vpop.f32.mrf.mxu1  ;;  %v3494_v40 = vpop.f32.mrf.mxu3 }
  0xc3   : > { %v3492_v39 = vpop.f32.mrf.mxu0  ;;  %533 = vmatmul.bf16.gmra.mxu1 %v209_v34  ;;  %751 = vmatmul.bf16.gmra.mxu2 %v897_v0  ;;  %v3028_v0 = vld [vmem:[%s4159_s1 + $0x220] sm:$0xff]  ;;  %v1155_v34 = vpack.c.bf16 %v1127_v30, %v1126_v29 }
  0xc4   : > { %2250 = vmatpush.bf16.msra.mxu0 %v3028_v0  ;;  %v1128_v0 = vld [vmem:[%s3261_s24 + $0x93] sm:$0xff] }
  0xc5   : > { %1015 = vmatmul.bf16.gmra.mxu3 %v3496_v41 }
  0xc6   : > { %1259 = vmatmul.bf16.gmra.mxu0 %v1152_v36  ;;  %v3498_v42 = vpop.f32.mrf.mxu2  ;;  %v876_v36 = vld [vmem:[%s3261_s24 + $0xa2] sm:$0xff] }
  0xc7   : > { %v3582_v47 = vpack.c.bf16 %v877_v37, %v876_v36 }
  0xc8   : > { %v3501_v43 = vpop.f32.mrf.mxu1  ;;  %v3505_v45 = vpop.f32.mrf.mxu3  ;;  %2251 = vmatpush.bf16.msra.mxu0 %v3027_v56 }
  0xcb   : > { %v3503_v44 = vpop.f32.mrf.mxu0 }
  0xce   : > { %v3511_v50 = vpop.f32.mrf.mxu2 }
  0xd0   : > { %v3516_v53 = vpop.f32.mrf.mxu1  ;;  %v3525_v59 = vpop.f32.mrf.mxu3 }
  0xd3   : > { %v3523_v58 = vpop.f32.mrf.mxu0  ;;  %538 = vmatmul.bf16.gmra.mxu1 %v210_v52  ;;  %756 = vmatmul.bf16.gmra.mxu2 %v3446_v9 }
  0xd5   : > { %1020 = vmatmul.bf16.gmra.mxu3 %v3528_v60 }
  0xd6   : > { %1264 = vmatmul.bf16.gmra.mxu0 %v1153_v54  ;;  %v3533_v62 = vpop.f32.mrf.mxu2  ;;  %v3003_v54 = vld [vmem:[%s4159_s1 + $0x158] sm:$0xff] }
  0xd7   : > { %1489 = vmatpush.bf16.msra.mxu1 %v3003_v54  ;;  %v188_v54 = vld [vmem:[%s3261_s24 + $0x98] sm:$0xff] }
  0xd8   : > { %v3536_v63 = vpop.f32.mrf.mxu1  ;;  %v3543_v2 = vpop.f32.mrf.mxu3 }
  0xdb   : > { %v3541_v1 = vpop.f32.mrf.mxu0 }
  0xde   : > { %v3549_v7 = vpop.f32.mrf.mxu2 }
  0xe0   : > { %v3551_v9 = vpop.f32.mrf.mxu1  ;;  %v3557_v14 = vpop.f32.mrf.mxu3 }
  0xe3   : > { %v3555_v13 = vpop.f32.mrf.mxu0  ;;  %543 = vmatmul.bf16.gmra.mxu1 %v211_v8  ;;  %761 = vmatmul.bf16.gmra.mxu2 %v3468_v23  ;;  %v212_v23 = vpack.c.bf16 %v184_v24, %v183_v21  ;;  %v1156_v8 = vpack.c.bf16 %v1129_v3, %v1128_v0 }
  0xe5   : > { %1025 = vmatmul.bf16.gmra.mxu3 %v3560_v15 }
  0xe6   : > { %1269 = vmatmul.bf16.gmra.mxu0 %v1154_v10  ;;  %v3562_v16 = vpop.f32.mrf.mxu2  ;;  %v878_v10 = vld [vmem:[%s3261_s24 + $0xb2] sm:$0xff] }
  0xe7   : > { %v3612_v24 = vpack.c.bf16 %v879_v11, %v878_v10  ;;  %v881_v10 = vld [vmem:[%s3261_s24 + $0xca] sm:$0xff] }
  0xe8   : > { %v3565_v17 = vpop.f32.mrf.mxu1  ;;  %v986_v20 = vpop.f32.mrf.mxu3 }
  0xeb   : > { %v3567_v19 = vpop.f32.mrf.mxu0 }
  0xee   : > { %v3573_v31 = vpop.f32.mrf.mxu2 }
  0xf0   : > { %v3575_v32 = vpop.f32.mrf.mxu1  ;;  %v988_v46 = vpop.f32.mrf.mxu3 }
  0xf3   : > { %v3579_v38 = vpop.f32.mrf.mxu0  ;;  %548 = vmatmul.bf16.gmra.mxu1 %v212_v23  ;;  %766 = vmatmul.bf16.gmra.mxu2 %v3496_v41 }
  0xf5   : > { %1030 = vmatmul.bf16.gmra.mxu3 %v3582_v47 }
  0xf6   : > { %1274 = vmatmul.bf16.gmra.mxu0 %v1155_v34  ;;  %v3590_v51 = vpop.f32.mrf.mxu2 }
  0xf8   : > { %v3593_v41 = vpop.f32.mrf.mxu1  ;;  %v991_v55 = vpop.f32.mrf.mxu3 }
  0xfb   : > { %v3595_v52 = vpop.f32.mrf.mxu0 }
  0xfe   : > { %v3607_v4 = vpop.f32.mrf.mxu2 }
 0x100   : > { %v514_v6 = vpop.f32.mrf.mxu1  ;;  %v993_v21 = vpop.f32.mrf.mxu3 }
 0x101   : > { %v515_v29 = vadd.f32 %v514_v6, %v3466_v22  ;;  %v1157_v6 = vpack.c.bf16 %v1131_v61, %v1130_v57  ;;  %v190_v57 = vld [vmem:[%s3261_s24 + $0xa8] sm:$0xff] }
 0x103   : > { %v1240_v12 = vpop.f32.mrf.mxu0  ;;  %553 = vmatmul.bf16.gmra.mxu1 %v213_v5  ;;  %771 = vmatmul.bf16.gmra.mxu2 %v3528_v60  ;;  %v187_v60 = vld [vmem:[%s3261_s24 + $0x90] sm:$0xff] }
 0x104   : > { %v214_v3 = vpack.c.bf16 %v188_v54, %v187_v60 }
 0x105   : > { %1035 = vmatmul.bf16.gmra.mxu3 %v3612_v24 }
 0x106   : > { %1279 = vmatmul.bf16.gmra.mxu0 %v1156_v8  ;;  %v732_v30 = vpop.f32.mrf.mxu2  ;;  %v880_v8 = vld [vmem:[%s3261_s24 + $0xc2] sm:$0xff] }
 0x107   : > { %v822_v23 = vadd.f32 %v732_v30, %v515_v29 }
 0x108   : > { %v516_v34 = vpop.f32.mrf.mxu1  ;;  %v3616_v48 = vpop.f32.mrf.mxu3 }
 0x109   : > { %v1076_v36 = vadd.f32 %v986_v20, %v822_v23  ;;  %v517_v56 = vadd.f32 %v516_v34, %v3478_v27 }
 0x10b   : > { %v1242_v37 = vpop.f32.mrf.mxu0  ;;  %v3618_v49 = vadd.f32 %v1240_v12, %v1076_v36  ;;  %v3630_v12 = vpack.c.bf16 %v881_v10, %v880_v8 }
 0x10e   : > { %v734_v22 = vpop.f32.mrf.mxu2 }
 0x10f   : > { %v823_v0 = vadd.f32 %v734_v22, %v517_v56  ;;  %v1132_v22 = vld [vmem:[%s3261_s24 + $0xb3] sm:$0xff] }
 0x110   : > { %v519_v5 = vpop.f32.mrf.mxu1  ;;  %v3627_v29 = vpop.f32.mrf.mxu3 }
 0x111   : > { %v1077_v11 = vadd.f32 %v988_v46, %v823_v0  ;;  %v520_v27 = vadd.f32 %v519_v5, %v3492_v39  ;;  %v3002_v39 = vld [vmem:[%s4159_s1 + $0x150] sm:$0xff]  ;;  %v1133_v0 = vld [vmem:[%s3261_s24 + $0xbb] sm:$0xff] }
 0x112   : > { %1490 = vmatpush.bf16.msra.mxu1 %v3002_v39  ;;  %v1158_v10 = vpack.c.bf16 %v1133_v0, %v1132_v22  ;;  %v192_v22 = vld [vmem:[%s3261_s24 + $0xb8] sm:$0xff] }
 0x113   : > { %v1245_v20 = vpop.f32.mrf.mxu0  ;;  %558 = vmatmul.bf16.gmra.mxu1 %v214_v3  ;;  %776 = vmatmul.bf16.gmra.mxu2 %v3560_v15  ;;  %v3632_v30 = vadd.f32 %v1242_v37, %v1077_v11  ;;  %v3010_v15 = vld [vmem:[%s4159_s1 + $0x190] sm:$0xff] }
 0x114   : > { %v3018_v37 = vld [vmem:[%s4159_s1 + $0x1d0] sm:$0xff]  ;;  %1744 = vmatpush.bf16.msra.mxu2 %v3010_v15 }
 0x115   : > { %1040 = vmatmul.bf16.gmra.mxu3 %v3630_v12  ;;  %v882_v11 = vld [vmem:[%s3261_s24 + $0xd2] sm:$0xff] }
 0x116   : > { %1284 = vmatmul.bf16.gmra.mxu0 %v1157_v6  ;;  %v737_v23 = vpop.f32.mrf.mxu2  ;;  %1998 = vmatpush.bf16.msra.mxu3 %v3018_v37 }
 0x117   : > { %v824_v34 = vadd.f32 %v737_v23, %v520_v27  ;;  %v883_v27 = vld [vmem:[%s3261_s24 + $0xda] sm:$0xff] }
 0x118   : > { %v521_v46 = vpop.f32.mrf.mxu1  ;;  %v1001_v54 = vpop.f32.mrf.mxu3 }
 0x119   : > { %v1078_v36 = vadd.f32 %v991_v55, %v824_v34  ;;  %v189_v55 = vld [vmem:[%s3261_s24 + $0xa0] sm:$0xff]  ;;  %v522_v61 = vadd.f32 %v521_v46, %v3503_v44  ;;  %v3658_v44 = vpack.c.bf16 %v883_v27, %v882_v11 }
 0x11a   : > { %v215_v6 = vpack.c.bf16 %v190_v57, %v189_v55  ;;  %v884_v27 = vld [vmem:[%s3261_s24 + $0xe2] sm:$0xff] }
 0x11b   : > { %v1247_v60 = vpop.f32.mrf.mxu0  ;;  %v3645_v56 = vadd.f32 %v1245_v20, %v1078_v36  ;;  %v3026_v20 = vld [vmem:[%s4159_s1 + $0x210] sm:$0xff] }
 0x11c   : > { %2252 = vmatpush.bf16.msra.mxu0 %v3026_v20 }
 0x11e   : > { %v739_v3 = vpop.f32.mrf.mxu2 }
 0x11f   : > { %v825_v5 = vadd.f32 %v739_v3, %v522_v61  ;;  %v1135_v3 = vld [vmem:[%s3261_s24 + $0xcb] sm:$0xff] }
 0x120   : > { %v524_v8 = vpop.f32.mrf.mxu1  ;;  %v1003_v36 = vpop.f32.mrf.mxu3 }
 0x121   : > { %v1079_v23 = vadd.f32 %v993_v21, %v825_v5  ;;  %v525_v21 = vadd.f32 %v524_v8, %v3523_v58  ;;  %v1134_v58 = vld [vmem:[%s3261_s24 + $0xc3] sm:$0xff] }
 0x122   : > { %v1159_v11 = vpack.c.bf16 %v1135_v3, %v1134_v58  ;;  %v194_v58 = vld [vmem:[%s3261_s24 + $0xc8] sm:$0xff]  ;;  %v1136_v3 = vld [vmem:[%s3261_s24 + $0xd3] sm:$0xff] }
 0x123   : > { %v1250_v34 = vpop.f32.mrf.mxu0  ;;  %563 = vmatmul.bf16.gmra.mxu1 %v215_v6  ;;  %781 = vmatmul.bf16.gmra.mxu2 %v3582_v47  ;;  %v3660_v46 = vadd.f32 %v1247_v60, %v1079_v23  ;;  %v191_v60 = vld [vmem:[%s3261_s24 + $0xb0] sm:$0xff] }
 0x124   : > { %v216_v8 = vpack.c.bf16 %v192_v22, %v191_v60  ;;  %v885_v23 = vld [vmem:[%s3261_s24 + $0xea] sm:$0xff] }
 0x125   : > { %1045 = vmatmul.bf16.gmra.mxu3 %v3658_v44 }
 0x126   : > { %1289 = vmatmul.bf16.gmra.mxu0 %v1158_v10  ;;  %v742_v15 = vpop.f32.mrf.mxu2 }
 0x127   : > { %v826_v37 = vadd.f32 %v742_v15, %v525_v21 }
 0x128   : > { %v526_v39 = vpop.f32.mrf.mxu1  ;;  %v3665_v57 = vpop.f32.mrf.mxu3 }
 0x129   : > { %v1080_v55 = vadd.f32 %v3616_v48, %v826_v37  ;;  %v527_v0 = vadd.f32 %v526_v39, %v3541_v1 }
 0x12b   : > { %v1252_v47 = vpop.f32.mrf.mxu0  ;;  %v3667_v61 = vadd.f32 %v1250_v34, %v1080_v55  ;;  %v3680_v34 = vpack.c.bf16 %v885_v23, %v884_v27  ;;  %v886_v23 = vld [vmem:[%s3261_s24 + $0xf2] sm:$0xff] }
 0x12e   : > { %v744_v5 = vpop.f32.mrf.mxu2 }
 0x12f   : > { %v827_v6 = vadd.f32 %v744_v5, %v527_v0  ;;  %v193_v0 = vld [vmem:[%s3261_s24 + $0xc0] sm:$0xff] }
 0x130   : > { %v529_v10 = vpop.f32.mrf.mxu1  ;;  %v3677_v21 = vpop.f32.mrf.mxu3  ;;  %v1137_v5 = vld [vmem:[%s3261_s24 + $0xdb] sm:$0xff] }
 0x131   : > { %v1081_v48 = vadd.f32 %v3627_v29, %v827_v6  ;;  %v530_v15 = vadd.f32 %v529_v10, %v3555_v13  ;;  %v3017_v13 = vld [vmem:[%s4159_s1 + $0x1c8] sm:$0xff]  ;;  %v217_v10 = vpack.c.bf16 %v194_v58, %v193_v0  ;;  %v1160_v27 = vpack.c.bf16 %v1137_v5, %v1136_v3  ;;  %v195_v3 = vld [vmem:[%s3261_s24 + $0xd0] sm:$0xff]  ;;  %v196_v5 = vld [vmem:[%s3261_s24 + $0xd8] sm:$0xff] }
 0x132   : > { %1999 = vmatpush.bf16.msra.mxu3 %v3017_v13 }
 0x133   : > { %v1255_v20 = vpop.f32.mrf.mxu0  ;;  %568 = vmatmul.bf16.gmra.mxu1 %v216_v8  ;;  %786 = vmatmul.bf16.gmra.mxu2 %v3612_v24  ;;  %v3682_v1 = vadd.f32 %v1252_v47, %v1081_v48  ;;  %v3009_v24 = vld [vmem:[%s4159_s1 + $0x188] sm:$0xff]  ;;  %v887_v48 = vld [vmem:[%s3261_s24 + $0xfa] sm:$0xff] }
 0x134   : > { %1745 = vmatpush.bf16.msra.mxu2 %v3009_v24 }
 0x135   : > { %1050 = vmatmul.bf16.gmra.mxu3 %v3680_v34 }
 0x136   : > { %1294 = vmatmul.bf16.gmra.mxu0 %v1159_v11  ;;  %v747_v37 = vpop.f32.mrf.mxu2 }
 0x137   : > { %v828_v39 = vadd.f32 %v747_v37, %v530_v15 }
 0x138   : > { %v531_v29 = vpop.f32.mrf.mxu1  ;;  %v3689_v22 = vpop.f32.mrf.mxu3 }
 0x139   : > { %v1082_v55 = vadd.f32 %v1001_v54, %v828_v39  ;;  %v532_v54 = vadd.f32 %v531_v29, %v3567_v19  ;;  %v3707_v19 = vpack.c.bf16 %v887_v48, %v886_v23 }
 0x13b   : > { %v1257_v60 = vpop.f32.mrf.mxu0  ;;  %v3694_v47 = vadd.f32 %v1255_v20, %v1082_v55  ;;  %v3001_v20 = vld [vmem:[%s4159_s1 + $0x148] sm:$0xff] }
 0x13c   : > { %1491 = vmatpush.bf16.msra.mxu1 %v3001_v20  ;;  %v889_v20 = vld [vmem:[%s3261_s24 + $0x10a] sm:$0xff] }
 0x13e   : > { %v749_v6 = vpop.f32.mrf.mxu2 }
 0x13f   : > { %v829_v8 = vadd.f32 %v749_v6, %v532_v54 }
 0x140   : > { %v534_v11 = vpop.f32.mrf.mxu1  ;;  %v1013_v39 = vpop.f32.mrf.mxu3 }
 0x141   : > { %v1083_v15 = vadd.f32 %v1003_v36, %v829_v8  ;;  %v3025_v36 = vld [vmem:[%s4159_s1 + $0x208] sm:$0xff]  ;;  %v535_v55 = vadd.f32 %v534_v11, %v3579_v38 }
 0x142   : > { %2253 = vmatpush.bf16.msra.mxu0 %v3025_v36  ;;  %v1138_v8 = vld [vmem:[%s3261_s24 + $0xe3] sm:$0xff]  ;;  %v1139_v38 = vld [vmem:[%s3261_s24 + $0xeb] sm:$0xff] }
 0x143   : > { %v1260_v37 = vpop.f32.mrf.mxu0  ;;  %573 = vmatmul.bf16.gmra.mxu1 %v217_v10  ;;  %791 = vmatmul.bf16.gmra.mxu2 %v3630_v12  ;;  %v3709_v29 = vadd.f32 %v1257_v60, %v1083_v15  ;;  %v1161_v48 = vpack.c.bf16 %v1139_v38, %v1138_v8  ;;  %v888_v15 = vld [vmem:[%s3261_s24 + $0x102] sm:$0xff]  ;;  %v1140_v38 = vld [vmem:[%s3261_s24 + $0xf3] sm:$0xff] }
 0x145   : > { %1055 = vmatmul.bf16.gmra.mxu3 %v3707_v19 }
 0x146   : > { %1299 = vmatmul.bf16.gmra.mxu0 %v1160_v27  ;;  %v752_v24 = vpop.f32.mrf.mxu2  ;;  %v218_v27 = vpack.c.bf16 %v196_v5, %v195_v3 }
 0x147   : > { %v830_v13 = vadd.f32 %v752_v24, %v535_v55 }
 0x148   : > { %v536_v12 = vpop.f32.mrf.mxu1  ;;  %v1016_v58 = vpop.f32.mrf.mxu3 }
 0x149   : > { %v1084_v60 = vadd.f32 %v3665_v57, %v830_v13  ;;  %v537_v6 = vadd.f32 %v536_v12, %v3595_v52  ;;  %v3730_v52 = vpack.c.bf16 %v889_v20, %v888_v15  ;;  %v890_v15 = vld [vmem:[%s3261_s24 + $0x112] sm:$0xff]  ;;  %v891_v20 = vld [vmem:[%s3261_s24 + $0x11a] sm:$0xff] }
 0x14b   : > { %v1262_v0 = vpop.f32.mrf.mxu0  ;;  %v3717_v54 = vadd.f32 %v1260_v37, %v1084_v60 }
 0x14e   : > { %v754_v10 = vpop.f32.mrf.mxu2 }
 0x14f   : > { %v831_v11 = vadd.f32 %v754_v10, %v537_v6  ;;  %v197_v6 = vld [vmem:[%s3261_s24 + $0xe0] sm:$0xff] }
 0x150   : > { %v539_v23 = vpop.f32.mrf.mxu1  ;;  %v3727_v55 = vpop.f32.mrf.mxu3 }
 0x151   : > { %v1085_v36 = vadd.f32 %v3677_v21, %v831_v11  ;;  %v540_v24 = vadd.f32 %v539_v23, %v3462_v18  ;;  %v1141_v18 = vld [vmem:[%s3261_s24 + $0xfb] sm:$0xff] }
 0x153   : > { %v1265_v57 = vpop.f32.mrf.mxu0  ;;  %578 = vmatmul.bf16.gmra.mxu1 %v218_v27  ;;  %796 = vmatmul.bf16.gmra.mxu2 %v3658_v44  ;;  %v3732_v37 = vadd.f32 %v1262_v0, %v1085_v36  ;;  %v198_v0 = vld [vmem:[%s3261_s24 + $0xe8] sm:$0xff] }
 0x154   : > { %v219_v27 = vpack.c.bf16 %v198_v0, %v197_v6 }
 0x155   : > { %1060 = vmatmul.bf16.gmra.mxu3 %v3730_v52 }
 0x156   : > { %1304 = vmatmul.bf16.gmra.mxu0 %v1161_v48  ;;  %v757_v13 = vpop.f32.mrf.mxu2  ;;  %v1162_v48 = vpack.c.bf16 %v1141_v18, %v1140_v38  ;;  %v199_v18 = vld [vmem:[%s3261_s24 + $0xf0] sm:$0xff] }
 0x157   : > { %v832_v12 = vadd.f32 %v757_v13, %v540_v24  ;;  %v3016_v24 = vld [vmem:[%s4159_s1 + $0x1c0] sm:$0xff]  ;;  %v3755_v13 = vpack.c.bf16 %v891_v20, %v890_v15 }
 0x158   : > { %v541_v21 = vpop.f32.mrf.mxu1  ;;  %v3737_v44 = vpop.f32.mrf.mxu3  ;;  %2000 = vmatpush.bf16.msra.mxu3 %v3016_v24  ;;  %v893_v24 = vld [vmem:[%s3261_s24 + $0x12a] sm:$0xff] }
 0x159   : > { %v1086_v60 = vadd.f32 %v3689_v22, %v832_v12  ;;  %v542_v8 = vadd.f32 %v541_v21, %v3476_v26  ;;  %v3000_v12 = vld [vmem:[%s4159_s1 + $0x140] sm:$0xff] }
 0x15a   : > { %1492 = vmatpush.bf16.msra.mxu1 %v3000_v12 }
 0x15b   : > { %v1267_v3 = vpop.f32.mrf.mxu0  ;;  %v3739_v5 = vadd.f32 %v1265_v57, %v1086_v60  ;;  %v3008_v57 = vld [vmem:[%s4159_s1 + $0x180] sm:$0xff] }
 0x15c   : > { %1746 = vmatpush.bf16.msra.mxu2 %v3008_v57  ;;  %v892_v57 = vld [vmem:[%s3261_s24 + $0x122] sm:$0xff] }
 0x15e   : > { %v759_v10 = vpop.f32.mrf.mxu2 }
 0x15f   : > { %v833_v11 = vadd.f32 %v759_v10, %v542_v8  ;;  %v200_v10 = vld [vmem:[%s3261_s24 + $0xf8] sm:$0xff] }
 0x160   : > { %v544_v23 = vpop.f32.mrf.mxu1  ;;  %v1023_v26 = vpop.f32.mrf.mxu3 }
 0x161   : > { %v1087_v36 = vadd.f32 %v1013_v39, %v833_v11  ;;  %v545_v21 = vadd.f32 %v544_v23, %v3488_v35  ;;  %v1143_v23 = vld [vmem:[%s3261_s24 + $0x10b] sm:$0xff] }
 0x163   : > { %v1270_v22 = vpop.f32.mrf.mxu0  ;;  %583 = vmatmul.bf16.gmra.mxu1 %v219_v27  ;;  %801 = vmatmul.bf16.gmra.mxu2 %v3680_v34  ;;  %v3760_v39 = vadd.f32 %v1267_v3, %v1087_v36  ;;  %v3024_v3 = vld [vmem:[%s4159_s1 + $0x200] sm:$0xff] }
 0x164   : > { %2254 = vmatpush.bf16.msra.mxu0 %v3024_v3  ;;  %v1142_v27 = vld [vmem:[%s3261_s24 + $0x103] sm:$0xff] }
 0x165   : > { %1065 = vmatmul.bf16.gmra.mxu3 %v3755_v13  ;;  %v1163_v36 = vpack.c.bf16 %v1143_v23, %v1142_v27  ;;  %v202_v27 = vld [vmem:[%s3261_s24 + $0x108] sm:$0xff]  ;;  %v1144_v23 = vld [vmem:[%s3261_s24 + $0x113] sm:$0xff] }
 0x166   : > { %1309 = vmatmul.bf16.gmra.mxu0 %v1162_v48  ;;  %v762_v60 = vpop.f32.mrf.mxu2 }
 0x167   : > { %v834_v34 = vadd.f32 %v762_v60, %v545_v21 }
 0x168   : > { %v546_v6 = vpop.f32.mrf.mxu1  ;;  %v1026_v38 = vpop.f32.mrf.mxu3 }
 0x169   : > { %v1088_v0 = vadd.f32 %v1016_v58, %v834_v34  ;;  %v547_v11 = vadd.f32 %v546_v6, %v3501_v43  ;;  %v220_v58 = vpack.c.bf16 %v200_v10, %v199_v18  ;;  %v911_v43 = vpack.c.bf16 %v893_v24, %v892_v57  ;;  %v1874_v57 = vld [vmem:[%s3261_s24 + $0x25] sm:$0xff]  ;;  %v1875_v24 = vld [vmem:[%s3261_s24 + $0x2d] sm:$0xff] }
 0x16b   : > { %v1272_v8 = vpop.f32.mrf.mxu0  ;;  %v3767_v35 = vadd.f32 %v1270_v22, %v1088_v0 }
 0x16e   : > { %v764_v48 = vpop.f32.mrf.mxu2 }
 0x16f   : > { %v835_v15 = vadd.f32 %v764_v48, %v547_v11  ;;  %v1145_v48 = vld [vmem:[%s3261_s24 + $0x11b] sm:$0xff] }
 0x170   : > { %v549_v20 = vpop.f32.mrf.mxu1  ;;  %v1028_v60 = vpop.f32.mrf.mxu3 }
 0x171   : > { %v1089_v12 = vadd.f32 %v3727_v55, %v835_v15  ;;  %v550_v34 = vadd.f32 %v549_v20, %v3516_v53 }
 0x173   : > { %v1275_v21 = vpop.f32.mrf.mxu0  ;;  %588 = vmatmul.bf16.gmra.mxu1 %v220_v58  ;;  %806 = vmatmul.bf16.gmra.mxu2 %v3707_v19  ;;  %v3778_v22 = vadd.f32 %v1272_v8, %v1089_v12  ;;  %v201_v19 = vld [vmem:[%s3261_s24 + $0x100] sm:$0xff] }
 0x174   : > { %v221_v58 = vpack.c.bf16 %v202_v27, %v201_v19 }
 0x175   : > { %1070 = vmatmul.bf16.gmra.mxu3 %v911_v43 }
 0x176   : > { %1314 = vmatmul.bf16.gmra.mxu0 %v1163_v36  ;;  %v767_v6 = vpop.f32.mrf.mxu2  ;;  %v1164_v36 = vpack.c.bf16 %v1145_v48, %v1144_v23  ;;  %v1147_v48 = vld [vmem:[%s3261_s24 + $0x12b] sm:$0xff] }
 0x177   : > { %v836_v0 = vadd.f32 %v767_v6, %v550_v34 }
 0x178   : > { %v551_v55 = vpop.f32.mrf.mxu1  ;;  %v1031_v10 = vpop.f32.mrf.mxu3 }
 0x179   : > { %v1090_v3 = vadd.f32 %v3737_v44, %v836_v0  ;;  %v552_v8 = vadd.f32 %v551_v55, %v3536_v63 }
 0x17b   : > { %v1277_v18 = vpop.f32.mrf.mxu0  ;;  %v3782_v11 = vadd.f32 %v1275_v21, %v1090_v3  ;;  %v1910_v21 = vpack.c.bf16 %v1875_v24, %v1874_v57  ;;  %v1877_v57 = vld [vmem:[%s3261_s24 + $0x3d] sm:$0xff] }
 0x17e   : > { %v769_v15 = vpop.f32.mrf.mxu2 }
 0x17f   : > { %v837_v53 = vadd.f32 %v769_v15, %v552_v8  ;;  %v204_v8 = vld [vmem:[%s3261_s24 + $0x118] sm:$0xff] }
 0x180   : > { %v554_v20 = vpop.f32.mrf.mxu1  ;;  %v1033_v44 = vpop.f32.mrf.mxu3 }
 0x181   : > { %v1091_v12 = vadd.f32 %v1023_v26, %v837_v53  ;;  %v555_v34 = vadd.f32 %v554_v20, %v3551_v9 }
 0x183   : > { %v1280_v43 = vpop.f32.mrf.mxu0  ;;  %593 = vmatmul.bf16.gmra.mxu1 %v221_v58  ;;  %811 = vmatmul.bf16.gmra.mxu2 %v3730_v52  ;;  %v3792_v63 = vadd.f32 %v1277_v18, %v1091_v12  ;;  %v203_v52 = vld [vmem:[%s3261_s24 + $0x110] sm:$0xff]  ;;  %v1146_v18 = vld [vmem:[%s3261_s24 + $0x123] sm:$0xff] }
 0x184   : > { %v222_v9 = vpack.c.bf16 %v204_v8, %v203_v52  ;;  %v1165_v20 = vpack.c.bf16 %v1147_v48, %v1146_v18  ;;  %v1366_v52 = vld [vmem:[%s3261_s24 + $0x14] sm:$0xff]  ;;  %v1367_v8 = vld [vmem:[%s3261_s24 + $0x1c] sm:$0xff]  ;;  %v2128_v48 = vld [vmem:[%s3261_s24 + $0x26] sm:$0xff] }
 0x185   : > { %2001 = vmatmul.bf16.vlgmr.msra.gmra.mxu3 %v1910_v21 }
 0x186   : > { %1319 = vmatmul.bf16.gmra.mxu0 %v1164_v36  ;;  %v772_v6 = vpop.f32.mrf.mxu2  ;;  %v1876_v36 = vld [vmem:[%s3261_s24 + $0x35] sm:$0xff] }
 0x187   : > { %v838_v0 = vadd.f32 %v772_v6, %v555_v34 }
 0x188   : > { %v556_v26 = vpop.f32.mrf.mxu1  ;;  %v1036_v19 = vpop.f32.mrf.mxu3 }
 0x189   : > { %v1092_v55 = vadd.f32 %v1026_v38, %v838_v0  ;;  %v557_v23 = vadd.f32 %v556_v26, %v3565_v17  ;;  %v1911_v17 = vpack.c.bf16 %v1877_v57, %v1876_v36  ;;  %v1878_v36 = vld [vmem:[%s3261_s24 + $0x45] sm:$0xff]  ;;  %v1879_v57 = vld [vmem:[%s3261_s24 + $0x4d] sm:$0xff] }
 0x18b   : > { %v1282_v3 = vpop.f32.mrf.mxu0  ;;  %v3795_v27 = vadd.f32 %v1280_v43, %v1092_v55 }
 0x18e   : > { %v774_v15 = vpop.f32.mrf.mxu2 }
 0x18f   : > { %v839_v53 = vadd.f32 %v774_v15, %v557_v23  ;;  %v1621_v23 = vld [vmem:[%s3261_s24 + $0x2c] sm:$0xff] }
 0x190   : > { %v559_v58 = vpop.f32.mrf.mxu1  ;;  %v1038_v12 = vpop.f32.mrf.mxu3  ;;  %v2129_v15 = vld [vmem:[%s3261_s24 + $0x2e] sm:$0xff] }
 0x191   : > { %v1093_v24 = vadd.f32 %v1028_v60, %v839_v53  ;;  %v560_v21 = vadd.f32 %v559_v58, %v3575_v32 }
 0x193   : > { %v1285_v38 = vpop.f32.mrf.mxu0  ;;  %598 = vmatmul.bf16.gmra.mxu1 %v222_v9  ;;  %816 = vmatmul.bf16.gmra.mxu2 %v3755_v13  ;;  %v3805_v43 = vadd.f32 %v1282_v3, %v1093_v24  ;;  %v1620_v3 = vld [vmem:[%s3261_s24 + $0x24] sm:$0xff]  ;;  %v1402_v9 = vpack.c.bf16 %v1367_v8, %v1366_v52 }
 0x194   : > { %v1656_v58 = vpack.c.bf16 %v1621_v23, %v1620_v3  ;;  %v1622_v23 = vld [vmem:[%s3261_s24 + $0x34] sm:$0xff] }
 0x195   : > { %2006 = vmatmul.bf16.gmra.mxu3 %v1911_v17 }
 0x196   : > { %1324 = vmatmul.bf16.gmra.mxu0 %v1165_v20  ;;  %v777_v34 = vpop.f32.mrf.mxu2 }
 0x197   : > { %v840_v6 = vadd.f32 %v777_v34, %v560_v21  ;;  %v1912_v21 = vpack.c.bf16 %v1879_v57, %v1878_v36  ;;  %v1881_v36 = vld [vmem:[%s3261_s24 + $0x5d] sm:$0xff] }
 0x198   : > { %v561_v60 = vpop.f32.mrf.mxu1  ;;  %v1041_v55 = vpop.f32.mrf.mxu3 }
 0x199   : > { %v1094_v0 = vadd.f32 %v1031_v10, %v840_v6  ;;  %v562_v18 = vadd.f32 %v561_v60, %v3593_v41  ;;  %v2164_v10 = vpack.c.bf16 %v2129_v15, %v2128_v48  ;;  %v2131_v15 = vld [vmem:[%s3261_s24 + $0x3e] sm:$0xff] }
 0x19b   : > { %v1287_v26 = vpop.f32.mrf.mxu0  ;;  %v3809_v13 = vadd.f32 %v1285_v38, %v1094_v0 }
 0x19e   : > { %v779_v32 = vpop.f32.mrf.mxu2 }
 0x19f   : > { %v841_v53 = vadd.f32 %v779_v32, %v562_v18  ;;  %v1623_v18 = vld [vmem:[%s3261_s24 + $0x3c] sm:$0xff] }
 0x1a0   : > { %v564_v20 = vpop.f32.mrf.mxu1  ;;  %v1043_v38 = vpop.f32.mrf.mxu3 }
 0x1a1   : > { %v1095_v24 = vadd.f32 %v1033_v44, %v841_v53  ;;  %v565_v34 = vadd.f32 %v564_v20, %v3473_v25  ;;  %v1657_v25 = vpack.c.bf16 %v1623_v18, %v1622_v23  ;;  %v1625_v18 = vld [vmem:[%s3261_s24 + $0x4c] sm:$0xff] }
 0x1a3   : > { %v1290_v17 = vpop.f32.mrf.mxu0  ;;  %1493 = vmatmul.bf16.vlgmr.msra.gmra.mxu1 %v1402_v9  ;;  %1747 = vmatmul.bf16.vlgmr.msra.gmra.mxu2 %v1656_v58  ;;  %v3819_v41 = vadd.f32 %v1287_v26, %v1095_v24  ;;  %v2130_v26 = vld [vmem:[%s3261_s24 + $0x36] sm:$0xff] }
 0x1a4   : > { %v2165_v20 = vpack.c.bf16 %v2131_v15, %v2130_v26  ;;  %v2133_v26 = vld [vmem:[%s3261_s24 + $0x4e] sm:$0xff] }
 0x1a5   : > { %2011 = vmatmul.bf16.gmra.mxu3 %v1912_v21 }
 0x1a6   : > { %2255 = vmatmul.bf16.vlgmr.msra.gmra.mxu0 %v2164_v10  ;;  %v782_v6 = vpop.f32.mrf.mxu2  ;;  %v1880_v10 = vld [vmem:[%s3261_s24 + $0x55] sm:$0xff] }
 0x1a7   : > { %v842_v60 = vadd.f32 %v782_v6, %v565_v34 }
 0x1a8   : > { %v566_v0 = vpop.f32.mrf.mxu1  ;;  %v1046_v8 = vpop.f32.mrf.mxu3 }
 0x1a9   : > { %v1096_v44 = vadd.f32 %v1036_v19, %v842_v60  ;;  %v567_v48 = vadd.f32 %v566_v0, %v3486_v33 }
 0x1ab   : > { %v1292_v52 = vpop.f32.mrf.mxu0  ;;  %v3822_v3 = vadd.f32 %v1290_v17, %v1096_v44  ;;  %v1913_v17 = vpack.c.bf16 %v1881_v36, %v1880_v10  ;;  %v1883_v10 = vld [vmem:[%s3261_s24 + $0x6d] sm:$0xff] }
 0x1ae   : > { %v784_v32 = vpop.f32.mrf.mxu2 }
 0x1af   : > { %v843_v53 = vadd.f32 %v784_v32, %v567_v48 }
 0x1b0   : > { %v569_v9 = vpop.f32.mrf.mxu1  ;;  %v1048_v19 = vpop.f32.mrf.mxu3 }
 0x1b1   : > { %v1097_v57 = vadd.f32 %v1038_v12, %v843_v53  ;;  %v570_v21 = vadd.f32 %v569_v9, %v3498_v42 }
 0x1b3   : > { %v1295_v24 = vpop.f32.mrf.mxu0  ;;  %1498 = vmatmul.bf16.gmra.mxu1 %v1656_v58  ;;  %1752 = vmatmul.bf16.gmra.mxu2 %v1657_v25  ;;  %v3831_v33 = vadd.f32 %v1292_v52, %v1097_v57  ;;  %v1624_v58 = vld [vmem:[%s3261_s24 + $0x44] sm:$0xff] }
 0x1b4   : > { %v2132_v52 = vld [vmem:[%s3261_s24 + $0x46] sm:$0xff]  ;;  %v1658_v42 = vpack.c.bf16 %v1625_v18, %v1624_v58  ;;  %v1627_v18 = vld [vmem:[%s3261_s24 + $0x5c] sm:$0xff] }
 0x1b5   : > { %2016 = vmatmul.bf16.gmra.mxu3 %v1913_v17  ;;  %v2166_v9 = vpack.c.bf16 %v2133_v26, %v2132_v52  ;;  %v2135_v52 = vld [vmem:[%s3261_s24 + $0x5e] sm:$0xff] }
 0x1b6   : > { %2260 = vmatmul.bf16.gmra.mxu0 %v2165_v20  ;;  %v787_v34 = vpop.f32.mrf.mxu2  ;;  %v1882_v20 = vld [vmem:[%s3261_s24 + $0x65] sm:$0xff] }
 0x1b7   : > { %v844_v6 = vadd.f32 %v787_v34, %v570_v21 }
 0x1b8   : > { %v571_v60 = vpop.f32.mrf.mxu1  ;;  %v1051_v44 = vpop.f32.mrf.mxu3 }
 0x1b9   : > { %v1098_v12 = vadd.f32 %v1041_v55, %v844_v6  ;;  %v572_v48 = vadd.f32 %v571_v60, %v3511_v50 }
 0x1bb   : > { %v1297_v0 = vpop.f32.mrf.mxu0  ;;  %v3834_v23 = vadd.f32 %v1295_v24, %v1098_v12  ;;  %v1914_v24 = vpack.c.bf16 %v1883_v10, %v1882_v20  ;;  %v1885_v20 = vld [vmem:[%s3261_s24 + $0x7d] sm:$0xff] }
 0x1be   : > { %v789_v15 = vpop.f32.mrf.mxu2 }
 0x1bf   : > { %v845_v32 = vadd.f32 %v789_v15, %v572_v48 }
 0x1c0   : > { %v574_v53 = vpop.f32.mrf.mxu1  ;;  %v1053_v55 = vpop.f32.mrf.mxu3 }
 0x1c1   : > { %v1099_v36 = vadd.f32 %v1043_v38, %v845_v32  ;;  %v575_v17 = vadd.f32 %v574_v53, %v3533_v62 }
 0x1c3   : > { %v1300_v57 = vpop.f32.mrf.mxu0  ;;  %1503 = vmatmul.bf16.gmra.mxu1 %v1657_v25  ;;  %1757 = vmatmul.bf16.gmra.mxu2 %v1658_v42  ;;  %v3843_v50 = vadd.f32 %v1297_v0, %v1099_v36  ;;  %v1626_v25 = vld [vmem:[%s3261_s24 + $0x54] sm:$0xff] }
 0x1c4   : > { %v2134_v0 = vld [vmem:[%s3261_s24 + $0x56] sm:$0xff]  ;;  %v1659_v62 = vpack.c.bf16 %v1627_v18, %v1626_v25  ;;  %v1629_v18 = vld [vmem:[%s3261_s24 + $0x6c] sm:$0xff] }
 0x1c5   : > { %2021 = vmatmul.bf16.gmra.mxu3 %v1914_v24  ;;  %v2167_v53 = vpack.c.bf16 %v2135_v52, %v2134_v0  ;;  %v2137_v0 = vld [vmem:[%s3261_s24 + $0x6e] sm:$0xff] }
 0x1c6   : > { %2265 = vmatmul.bf16.gmra.mxu0 %v2166_v9  ;;  %v792_v21 = vpop.f32.mrf.mxu2  ;;  %v1884_v9 = vld [vmem:[%s3261_s24 + $0x75] sm:$0xff] }
 0x1c7   : > { %v846_v34 = vadd.f32 %v792_v21, %v575_v17 }
 0x1c8   : > { %v576_v6 = vpop.f32.mrf.mxu1  ;;  %v1056_v12 = vpop.f32.mrf.mxu3 }
 0x1c9   : > { %v1100_v38 = vadd.f32 %v1046_v8, %v846_v34  ;;  %v577_v48 = vadd.f32 %v576_v6, %v3549_v7 }
 0x1cb   : > { %v1302_v60 = vpop.f32.mrf.mxu0  ;;  %v3846_v58 = vadd.f32 %v1300_v57, %v1100_v38  ;;  %v1915_v57 = vpack.c.bf16 %v1885_v20, %v1884_v9  ;;  %v1887_v9 = vld [vmem:[%s3261_s24 + $0x8d] sm:$0xff] }
 0x1ce   : > { %v794_v26 = vpop.f32.mrf.mxu2 }
 0x1cf   : > { %v847_v15 = vadd.f32 %v794_v26, %v577_v48 }
 0x1d0   : > { %v579_v32 = vpop.f32.mrf.mxu1  ;;  %v1058_v8 = vpop.f32.mrf.mxu3 }
 0x1d1   : > { %v1101_v10 = vadd.f32 %v1048_v19, %v847_v15  ;;  %v580_v24 = vadd.f32 %v579_v32, %v3562_v16 }
 0x1d3   : > { %v1305_v36 = vpop.f32.mrf.mxu0  ;;  %1508 = vmatmul.bf16.gmra.mxu1 %v1658_v42  ;;  %1762 = vmatmul.bf16.gmra.mxu2 %v1659_v62  ;;  %v3855_v7 = vadd.f32 %v1302_v60, %v1101_v10  ;;  %v1628_v42 = vld [vmem:[%s3261_s24 + $0x64] sm:$0xff] }
 0x1d4   : > { %v2136_v60 = vld [vmem:[%s3261_s24 + $0x66] sm:$0xff]  ;;  %v1660_v16 = vpack.c.bf16 %v1629_v18, %v1628_v42  ;;  %v1631_v18 = vld [vmem:[%s3261_s24 + $0x7c] sm:$0xff] }
 0x1d5   : > { %2026 = vmatmul.bf16.gmra.mxu3 %v1915_v57  ;;  %v2168_v32 = vpack.c.bf16 %v2137_v0, %v2136_v60  ;;  %v2139_v60 = vld [vmem:[%s3261_s24 + $0x7e] sm:$0xff] }
 0x1d6   : > { %2270 = vmatmul.bf16.gmra.mxu0 %v2167_v53  ;;  %v797_v17 = vpop.f32.mrf.mxu2  ;;  %v1886_v53 = vld [vmem:[%s3261_s24 + $0x85] sm:$0xff] }
 0x1d7   : > { %v848_v21 = vadd.f32 %v797_v17, %v580_v24 }
 0x1d8   : > { %v581_v34 = vpop.f32.mrf.mxu1  ;;  %v1061_v38 = vpop.f32.mrf.mxu3 }
 0x1d9   : > { %v1102_v19 = vadd.f32 %v1051_v44, %v848_v21  ;;  %v582_v48 = vadd.f32 %v581_v34, %v3573_v31 }
 0x1db   : > { %v1307_v6 = vpop.f32.mrf.mxu0  ;;  %v3858_v25 = vadd.f32 %v1305_v36, %v1102_v19  ;;  %v1916_v36 = vpack.c.bf16 %v1887_v9, %v1886_v53  ;;  %v1889_v53 = vld [vmem:[%s3261_s24 + $0x9d] sm:$0xff] }
 0x1de   : > { %v799_v52 = vpop.f32.mrf.mxu2 }
 0x1df   : > { %v849_v26 = vadd.f32 %v799_v52, %v582_v48 }
 0x1e0   : > { %v584_v15 = vpop.f32.mrf.mxu1  ;;  %v1063_v44 = vpop.f32.mrf.mxu3 }
 0x1e1   : > { %v1103_v20 = vadd.f32 %v1053_v55, %v849_v26  ;;  %v585_v57 = vadd.f32 %v584_v15, %v3590_v51 }
 0x1e3   : > { %v1310_v10 = vpop.f32.mrf.mxu0  ;;  %1513 = vmatmul.bf16.gmra.mxu1 %v1659_v62  ;;  %1767 = vmatmul.bf16.gmra.mxu2 %v1660_v16  ;;  %v3867_v31 = vadd.f32 %v1307_v6, %v1103_v20  ;;  %v1630_v62 = vld [vmem:[%s3261_s24 + $0x74] sm:$0xff] }
 0x1e4   : > { %v2138_v6 = vld [vmem:[%s3261_s24 + $0x76] sm:$0xff]  ;;  %v1661_v51 = vpack.c.bf16 %v1631_v18, %v1630_v62  ;;  %v1633_v18 = vld [vmem:[%s3261_s24 + $0x8c] sm:$0xff] }
 0x1e5   : > { %2031 = vmatmul.bf16.gmra.mxu3 %v1916_v36  ;;  %v2169_v15 = vpack.c.bf16 %v2139_v60, %v2138_v6  ;;  %v2141_v6 = vld [vmem:[%s3261_s24 + $0x8e] sm:$0xff] }
 0x1e6   : > { %2275 = vmatmul.bf16.gmra.mxu0 %v2168_v32  ;;  %v802_v24 = vpop.f32.mrf.mxu2  ;;  %v1888_v32 = vld [vmem:[%s3261_s24 + $0x95] sm:$0xff] }
 0x1e7   : > { %v850_v17 = vadd.f32 %v802_v24, %v585_v57 }
 0x1e8   : > { %v586_v21 = vpop.f32.mrf.mxu1  ;;  %v1066_v19 = vpop.f32.mrf.mxu3 }
 0x1e9   : > { %v1104_v55 = vadd.f32 %v1056_v12, %v850_v17  ;;  %v587_v48 = vadd.f32 %v586_v21, %v3607_v4 }
 0x1eb   : > { %v1312_v34 = vpop.f32.mrf.mxu0  ;;  %v3870_v42 = vadd.f32 %v1310_v10, %v1104_v55  ;;  %v1917_v10 = vpack.c.bf16 %v1889_v53, %v1888_v32  ;;  %v1891_v32 = vld [vmem:[%s3261_s24 + $0xad] sm:$0xff] }
 0x1ee   : > { %v804_v0 = vpop.f32.mrf.mxu2 }
 0x1ef   : > { %v851_v52 = vadd.f32 %v804_v0, %v587_v48 }
 0x1f0   : > { %v589_v26 = vpop.f32.mrf.mxu1  ;;  %v1068_v12 = vpop.f32.mrf.mxu3 }
 0x1f1   : > { %v1105_v9 = vadd.f32 %v1058_v8, %v851_v52  ;;  %v590_v36 = vadd.f32 %v589_v26, %v3480_v28 }
 0x1f3   : > { %v1315_v20 = vpop.f32.mrf.mxu0  ;;  %1518 = vmatmul.bf16.gmra.mxu1 %v1660_v16  ;;  %1772 = vmatmul.bf16.gmra.mxu2 %v1661_v51  ;;  %v3879_v4 = vadd.f32 %v1312_v34, %v1105_v9  ;;  %v1632_v16 = vld [vmem:[%s3261_s24 + $0x84] sm:$0xff] }
 0x1f4   : > { %v2140_v34 = vld [vmem:[%s3261_s24 + $0x86] sm:$0xff]  ;;  %v1662_v28 = vpack.c.bf16 %v1633_v18, %v1632_v16  ;;  %v1635_v18 = vld [vmem:[%s3261_s24 + $0x9c] sm:$0xff] }
 0x1f5   : > { %2036 = vmatmul.bf16.gmra.mxu3 %v1917_v10  ;;  %v2170_v26 = vpack.c.bf16 %v2141_v6, %v2140_v34  ;;  %v2143_v34 = vld [vmem:[%s3261_s24 + $0x9e] sm:$0xff] }
 0x1f6   : > { %2280 = vmatmul.bf16.gmra.mxu0 %v2169_v15  ;;  %v807_v57 = vpop.f32.mrf.mxu2  ;;  %v1890_v15 = vld [vmem:[%s3261_s24 + $0xa5] sm:$0xff] }
 0x1f7   : > { %v852_v24 = vadd.f32 %v807_v57, %v590_v36 }
 0x1f8   : > { %v591_v17 = vpop.f32.mrf.mxu1  ;;  %v1071_v55 = vpop.f32.mrf.mxu3 }
 0x1f9   : > { %v1106_v8 = vadd.f32 %v1061_v38, %v852_v24  ;;  %v592_v48 = vadd.f32 %v591_v17, %v3494_v40 }
 0x1fb   : > { %v1317_v21 = vpop.f32.mrf.mxu0  ;;  %v3882_v62 = vadd.f32 %v1315_v20, %v1106_v8  ;;  %v1918_v20 = vpack.c.bf16 %v1891_v32, %v1890_v15  ;;  %v1893_v15 = vld [vmem:[%s3261_s24 + $0xbd] sm:$0xff] }
 0x1fe   : > { %v809_v60 = vpop.f32.mrf.mxu2 }
 0x1ff   : > { %v853_v0 = vadd.f32 %v809_v60, %v592_v48 }
 0x200   : > { %v594_v52 = vpop.f32.mrf.mxu1  ;;  %v1073_v38 = vpop.f32.mrf.mxu3 }
 0x201   : > { %v1107_v53 = vadd.f32 %v1063_v44, %v853_v0  ;;  %v595_v10 = vadd.f32 %v594_v52, %v3505_v45 }
 0x203   : > { %v1320_v9 = vpop.f32.mrf.mxu0  ;;  %1523 = vmatmul.bf16.gmra.mxu1 %v1661_v51  ;;  %1777 = vmatmul.bf16.gmra.mxu2 %v1662_v28  ;;  %v3891_v40 = vadd.f32 %v1317_v21, %v1107_v53  ;;  %v1634_v51 = vld [vmem:[%s3261_s24 + $0x94] sm:$0xff] }
 0x204   : > { %v2142_v21 = vld [vmem:[%s3261_s24 + $0x96] sm:$0xff]  ;;  %v1663_v45 = vpack.c.bf16 %v1635_v18, %v1634_v51  ;;  %v1636_v51 = vld [vmem:[%s3261_s24 + $0xa4] sm:$0xff]  ;;  %v1637_v18 = vld [vmem:[%s3261_s24 + $0xac] sm:$0xff] }
 0x205   : > { %2041 = vmatmul.bf16.gmra.mxu3 %v1918_v20  ;;  %v2171_v52 = vpack.c.bf16 %v2143_v34, %v2142_v21  ;;  %v2145_v21 = vld [vmem:[%s3261_s24 + $0xae] sm:$0xff] }
 0x206   : > { %2285 = vmatmul.bf16.gmra.mxu0 %v2170_v26  ;;  %v812_v36 = vpop.f32.mrf.mxu2  ;;  %v1892_v26 = vld [vmem:[%s3261_s24 + $0xb5] sm:$0xff] }
 0x207   : > { %v854_v57 = vadd.f32 %v812_v36, %v595_v10 }
 0x208   : > { %v596_v24 = vpop.f32.mrf.mxu1  ;;  %v2002_v8 = vpop.f32.mrf.mxu3 }
 0x209   : > { %v1108_v44 = vadd.f32 %v1066_v19, %v854_v57  ;;  %v597_v48 = vadd.f32 %v596_v24, %v3525_v59 }
 0x20b   : > { %v1322_v17 = vpop.f32.mrf.mxu0  ;;  %v3894_v16 = vadd.f32 %v1320_v9, %v1108_v44  ;;  %v1919_v9 = vpack.c.bf16 %v1893_v15, %v1892_v26 }
 0x20e   : > { %v814_v6 = vpop.f32.mrf.mxu2 }
 0x20f   : > { %v855_v60 = vadd.f32 %v814_v6, %v597_v48  ;;  %v2144_v48 = vld [vmem:[%s3261_s24 + $0xa6] sm:$0xff]  ;;  %v1664_v6 = vpack.c.bf16 %v1637_v18, %v1636_v51  ;;  %v1639_v51 = vld [vmem:[%s3261_s24 + $0xbc] sm:$0xff] }
 0x210   : > { %v599_v0 = vpop.f32.mrf.mxu1  ;;  %v2004_v19 = vpop.f32.mrf.mxu3 }
 0x211   : > { %v1109_v32 = vadd.f32 %v1068_v12, %v855_v60  ;;  %v600_v20 = vadd.f32 %v599_v0, %v3543_v2  ;;  %v2172_v0 = vpack.c.bf16 %v2145_v21, %v2144_v48  ;;  %v2146_v48 = vld [vmem:[%s3261_s24 + $0xb6] sm:$0xff]  ;;  %v2147_v21 = vld [vmem:[%s3261_s24 + $0xbe] sm:$0xff] }
 0x213   : > { %v1325_v53 = vpop.f32.mrf.mxu0  ;;  %1528 = vmatmul.bf16.gmra.mxu1 %v1662_v28  ;;  %1782 = vmatmul.bf16.gmra.mxu2 %v1663_v45  ;;  %v3903_v59 = vadd.f32 %v1322_v17, %v1109_v32 }
 0x215   : > { %2046 = vmatmul.bf16.gmra.mxu3 %v1919_v9 }
 0x216   : > { %2290 = vmatmul.bf16.gmra.mxu0 %v2171_v52  ;;  %v817_v10 = vpop.f32.mrf.mxu2  ;;  %v1894_v52 = vld [vmem:[%s3261_s24 + $0xc5] sm:$0xff] }
 0x217   : > { %v856_v36 = vadd.f32 %v817_v10, %v600_v20 }
 0x218   : > { %v601_v57 = vpop.f32.mrf.mxu1  ;;  %v3906_v44 = vpop.f32.mrf.mxu3 }
 0x219   : > { %v1110_v12 = vadd.f32 %v1071_v55, %v856_v36  ;;  %v602_v17 = vadd.f32 %v601_v57, %v3557_v14  ;;  %v1895_v55 = vld [vmem:[%s3261_s24 + $0xcd] sm:$0xff] }
 0x21b   : > { %v1327_v24 = vpop.f32.mrf.mxu0  ;;  %v3908_v28 = vadd.f32 %v1325_v53, %v1110_v12  ;;  %v1920_v53 = vpack.c.bf16 %v1895_v55, %v1894_v52  ;;  %v1896_v52 = vld [vmem:[%s3261_s24 + $0xd5] sm:$0xff]  ;;  %v1897_v55 = vld [vmem:[%s3261_s24 + $0xdd] sm:$0xff] }
 0x21e   : > { %v819_v34 = vpop.f32.mrf.mxu2 }
 0x21f   : > { %v857_v2 = vadd.f32 %v819_v34, %v602_v17 }
 0x220   : > { %v1494_v60 = vpop.f32.mrf.mxu1  ;;  %v3917_v32 = vpop.f32.mrf.mxu3 }
 0x221   : > { %v1111_v26 = vadd.f32 %v1073_v38, %v857_v2  ;;  %v1584_v9 = vadd.f32 %v1494_v60, %v3618_v49 }
 0x223   : > { %v2256_v15 = vpop.f32.mrf.mxu0  ;;  %1533 = vmatmul.bf16.gmra.mxu1 %v1663_v45  ;;  %1787 = vmatmul.bf16.gmra.mxu2 %v1664_v6  ;;  %v3919_v14 = vadd.f32 %v1327_v24, %v1111_v26  ;;  %v3928_v45 = vld [vmem:[%s4160_s2] ss:$0 sm:$0xff]  ;;  %v1638_v24 = vld [vmem:[%s3261_s24 + $0xb4] sm:$0xff] }
 0x224   : > { %v1665_v2 = vpack.c.bf16 %v1639_v51, %v1638_v24  ;;  %v1640_v51 = vld [vmem:[%s3261_s24 + $0xc4] sm:$0xff] }
 0x225   : > { %2051 = vmatmul.bf16.gmra.mxu3 %v1920_v53 }
 0x226   : > { %2295 = vmatmul.bf16.gmra.mxu0 %v2172_v0  ;;  %v1748_v20 = vpop.f32.mrf.mxu2  ;;  %v2173_v0 = vpack.c.bf16 %v2147_v21, %v2146_v48  ;;  %v2148_v48 = vld [vmem:[%s3261_s24 + $0xc6] sm:$0xff]  ;;  %v2149_v21 = vld [vmem:[%s3261_s24 + $0xce] sm:$0xff] }
 0x227   : > { %v1838_v10 = vadd.f32 %v1748_v20, %v1584_v9 }
 0x228   : > { %v1496_v38 = vpop.f32.mrf.mxu1  ;;  %v3930_v12 = vpop.f32.mrf.mxu3 }
 0x229   : > { %v2092_v36 = vadd.f32 %v2002_v8, %v1838_v10  ;;  %v1585_v17 = vadd.f32 %v1496_v38, %v3632_v30  ;;  %v1921_v30 = vpack.c.bf16 %v1897_v55, %v1896_v52  ;;  %v1898_v52 = vld [vmem:[%s3261_s24 + $0xe5] sm:$0xff]  ;;  %v1899_v55 = vld [vmem:[%s3261_s24 + $0xed] sm:$0xff] }
 0x22b   : > { %v2258_v57 = vpop.f32.mrf.mxu0  ;;  %v2346_v49 = vadd.f32 %v2256_v15, %v2092_v36 }
 0x22d   : > { %v2386_v18 = vadd.f32 %v3928_v45, %v2346_v49 }
 0x22e   : > { %v1750_v8 = vpop.f32.mrf.mxu2 }
 0x22f   : > { %2422 = vst [vmem:[%s3938_s19] sm:$0xff] %v2386_v18  ;;  %v1839_v34 = vadd.f32 %v1750_v8, %v1585_v17  ;;  %v1641_v18 = vld [vmem:[%s3261_s24 + $0xcc] sm:$0xff] }
 0x230   : > { %v1499_v60 = vpop.f32.mrf.mxu1  ;;  %v3943_v53 = vpop.f32.mrf.mxu3 }
 0x231   : > { %v2093_v26 = vadd.f32 %v2004_v19, %v1839_v34  ;;  %v1586_v10 = vadd.f32 %v1499_v60, %v3645_v56  ;;  %v1666_v60 = vpack.c.bf16 %v1641_v18, %v1640_v51  ;;  %v1643_v51 = vld [vmem:[%s3261_s24 + $0xdc] sm:$0xff] }
 0x233   : > { %v2261_v15 = vpop.f32.mrf.mxu0  ;;  %v2347_v9 = vadd.f32 %v2258_v57, %v2093_v26  ;;  %1538 = vmatmul.bf16.gmra.mxu1 %v1664_v6  ;;  %1792 = vmatmul.bf16.gmra.mxu2 %v1665_v2 }
 0x235   : > { %v2387_v20 = vadd.f32 %v3928_v45, %v2347_v9  ;;  %2056 = vmatmul.bf16.gmra.mxu3 %v1921_v30 }
 0x236   : > { %2300 = vmatmul.bf16.gmra.mxu0 %v2173_v0  ;;  %v1753_v38 = vpop.f32.mrf.mxu2  ;;  %v2174_v0 = vpack.c.bf16 %v2149_v21, %v2148_v48 }
 0x237   : > { %2423 = vst [vmem:[%s3938_s19 + $0x8] sm:$0xff] %v2387_v20  ;;  %v1840_v19 = vadd.f32 %v1753_v38, %v1586_v10 }
 0x238   : > { %v1501_v36 = vpop.f32.mrf.mxu1  ;;  %v3949_v49 = vpop.f32.mrf.mxu3 }
 0x239   : > { %v2094_v57 = vadd.f32 %v3906_v44, %v1840_v19  ;;  %v1587_v56 = vadd.f32 %v1501_v36, %v3660_v46  ;;  %v1922_v46 = vpack.c.bf16 %v1899_v55, %v1898_v52 }
 0x23b   : > { %v2263_v6 = vpop.f32.mrf.mxu0  ;;  %v2348_v24 = vadd.f32 %v2261_v15, %v2094_v57 }
 0x23d   : > { %v2388_v17 = vadd.f32 %v3928_v45, %v2348_v24  ;;  %v1642_v24 = vld [vmem:[%s3261_s24 + $0xd4] sm:$0xff] }
 0x23e   : > { %v1755_v8 = vpop.f32.mrf.mxu2 }
 0x23f   : > { %2424 = vst [vmem:[%s3938_s19 + $0x10] sm:$0xff] %v2388_v17  ;;  %v1841_v34 = vadd.f32 %v1755_v8, %v1587_v56  ;;  %v2150_v17 = vld [vmem:[%s3261_s24 + $0xd6] sm:$0xff]  ;;  %v2151_v56 = vld [vmem:[%s3261_s24 + $0xde] sm:$0xff]  ;;  %v1667_v8 = vpack.c.bf16 %v1643_v51, %v1642_v24  ;;  %v2152_v24 = vld [vmem:[%s3261_s24 + $0xe6] sm:$0xff] }
 0x240   : > { %v1504_v44 = vpop.f32.mrf.mxu1  ;;  %v3961_v9 = vpop.f32.mrf.mxu3  ;;  %v2153_v51 = vld [vmem:[%s3261_s24 + $0xee] sm:$0xff] }
 0x241   : > { %v2095_v26 = vadd.f32 %v3917_v32, %v1841_v34  ;;  %v1588_v10 = vadd.f32 %v1504_v44, %v3667_v61  ;;  %v2175_v34 = vpack.c.bf16 %v2151_v56, %v2150_v17  ;;  %v1900_v44 = vld [vmem:[%s3261_s24 + $0xf5] sm:$0xff]  ;;  %v2176_v56 = vpack.c.bf16 %v2153_v51, %v2152_v24  ;;  %v1905_v51 = vld [vmem:[%s3261_s24 + $0x11d] sm:$0xff] }
 0x242   : > { %v1904_v24 = vld [vmem:[%s3261_s24 + $0x115] sm:$0xff] }
 0x243   : > { %v2266_v15 = vpop.f32.mrf.mxu0  ;;  %v2349_v30 = vadd.f32 %v2263_v6, %v2095_v26  ;;  %1543 = vmatmul.bf16.gmra.mxu1 %v1665_v2  ;;  %1797 = vmatmul.bf16.gmra.mxu2 %v1666_v60 }
 0x245   : > { %v2389_v20 = vadd.f32 %v3928_v45, %v2349_v30  ;;  %2061 = vmatmul.bf16.gmra.mxu3 %v1922_v46 }
 0x246   : > { %2305 = vmatmul.bf16.gmra.mxu0 %v2174_v0  ;;  %v1758_v38 = vpop.f32.mrf.mxu2  ;;  %v1901_v0 = vld [vmem:[%s3261_s24 + $0xfd] sm:$0xff] }
 0x247   : > { %2425 = vst [vmem:[%s3938_s19 + $0x18] sm:$0xff] %v2389_v20  ;;  %v1842_v32 = vadd.f32 %v1758_v38, %v1588_v10 }
 0x248   : > { %v1506_v19 = vpop.f32.mrf.mxu1  ;;  %v3967_v57 = vpop.f32.mrf.mxu3 }
 0x249   : > { %v2096_v36 = vadd.f32 %v3930_v12, %v1842_v32  ;;  %v1589_v61 = vadd.f32 %v1506_v19, %v3682_v1  ;;  %v1923_v1 = vpack.c.bf16 %v1901_v0, %v1900_v44 }
 0x24b   : > { %v2268_v2 = vpop.f32.mrf.mxu0  ;;  %v2350_v6 = vadd.f32 %v2266_v15, %v2096_v36  ;;  %v1644_v36 = vld [vmem:[%s3261_s24 + $0xe4] sm:$0xff] }
 0x24d   : > { %v2390_v18 = vadd.f32 %v3928_v45, %v2350_v6 }
 0x24e   : > { %v1760_v48 = vpop.f32.mrf.mxu2 }
 0x24f   : > { %2426 = vst [vmem:[%s3938_s19 + $0x20] sm:$0xff] %v2390_v18  ;;  %v1843_v21 = vadd.f32 %v1760_v48, %v1589_v61  ;;  %v1902_v48 = vld [vmem:[%s3261_s24 + $0x105] sm:$0xff] }
 0x250   : > { %v1509_v12 = vpop.f32.mrf.mxu1  ;;  %v3979_v26 = vpop.f32.mrf.mxu3 }
 0x251   : > { %v2097_v52 = vadd.f32 %v3943_v53, %v1843_v21  ;;  %v1590_v46 = vadd.f32 %v1509_v12, %v3694_v47  ;;  %v1903_v21 = vld [vmem:[%s3261_s24 + $0x10d] sm:$0xff] }
 0x253   : > { %v2271_v55 = vpop.f32.mrf.mxu0  ;;  %v2351_v15 = vadd.f32 %v2268_v2, %v2097_v52  ;;  %1548 = vmatmul.bf16.gmra.mxu1 %v1666_v60  ;;  %1802 = vmatmul.bf16.gmra.mxu2 %v1667_v8  ;;  %v1645_v2 = vld [vmem:[%s3261_s24 + $0xec] sm:$0xff] }
 0x254   : > { %v1668_v17 = vpack.c.bf16 %v1645_v2, %v1644_v36 }
 0x255   : > { %v2391_v30 = vadd.f32 %v3928_v45, %v2351_v15  ;;  %2066 = vmatmul.bf16.gmra.mxu3 %v1923_v1 }
 0x256   : > { %2310 = vmatmul.bf16.gmra.mxu0 %v2175_v34  ;;  %v1763_v20 = vpop.f32.mrf.mxu2 }
 0x257   : > { %2427 = vst [vmem:[%s3938_s19 + $0x28] sm:$0xff] %v2391_v30  ;;  %v1844_v53 = vadd.f32 %v1763_v20, %v1590_v46 }
 0x258   : > { %v1511_v10 = vpop.f32.mrf.mxu1  ;;  %v3985_v32 = vpop.f32.mrf.mxu3 }
 0x259   : > { %v2098_v38 = vadd.f32 %v3949_v49, %v1844_v53  ;;  %v1591_v47 = vadd.f32 %v1511_v10, %v3709_v29  ;;  %v1924_v29 = vpack.c.bf16 %v1903_v21, %v1902_v48  ;;  %v1646_v53 = vld [vmem:[%s3261_s24 + $0xf4] sm:$0xff]  ;;  %v1647_v10 = vld [vmem:[%s3261_s24 + $0xfc] sm:$0xff] }
 0x25b   : > { %v2273_v60 = vpop.f32.mrf.mxu0  ;;  %v2352_v19 = vadd.f32 %v2271_v55, %v2098_v38 }
 0x25d   : > { %v2392_v6 = vadd.f32 %v3928_v45, %v2352_v19  ;;  %v2155_v19 = vld [vmem:[%s3261_s24 + $0xfe] sm:$0xff] }
 0x25e   : > { %v1765_v18 = vpop.f32.mrf.mxu2 }
 0x25f   : > { %2428 = vst [vmem:[%s3938_s19 + $0x30] sm:$0xff] %v2392_v6  ;;  %v1845_v61 = vadd.f32 %v1765_v18, %v1591_v47  ;;  %v1669_v6 = vpack.c.bf16 %v1647_v10, %v1646_v53 }
 0x260   : > { %v1514_v49 = vpop.f32.mrf.mxu1  ;;  %v3997_v44 = vpop.f32.mrf.mxu3 }
 0x261   : > { %v2099_v12 = vadd.f32 %v3961_v9, %v1845_v61  ;;  %v1592_v55 = vadd.f32 %v1514_v49, %v3717_v54 }
 0x263   : > { %v2276_v34 = vpop.f32.mrf.mxu0  ;;  %v2353_v0 = vadd.f32 %v2273_v60, %v2099_v12  ;;  %1553 = vmatmul.bf16.gmra.mxu1 %v1667_v8  ;;  %1807 = vmatmul.bf16.gmra.mxu2 %v1668_v17  ;;  %v2154_v60 = vld [vmem:[%s3261_s24 + $0xf6] sm:$0xff] }
 0x264   : > { %v2177_v47 = vpack.c.bf16 %v2155_v19, %v2154_v60 }
 0x265   : > { %v2393_v52 = vadd.f32 %v3928_v45, %v2353_v0  ;;  %2071 = vmatmul.bf16.gmra.mxu3 %v1924_v29 }
 0x266   : > { %2315 = vmatmul.bf16.gmra.mxu0 %v2176_v56  ;;  %v1768_v15 = vpop.f32.mrf.mxu2 }
 0x267   : > { %2429 = vst [vmem:[%s3938_s19 + $0x38] sm:$0xff] %v2393_v52  ;;  %v1846_v9 = vadd.f32 %v1768_v15, %v1592_v55  ;;  %v1648_v55 = vld [vmem:[%s3261_s24 + $0x104] sm:$0xff]  ;;  %v1649_v15 = vld [vmem:[%s3261_s24 + $0x10c] sm:$0xff] }
 0x268   : > { %v1516_v1 = vpop.f32.mrf.mxu1  ;;  %v4003_v46 = vpop.f32.mrf.mxu3  ;;  %v1670_v53 = vpack.c.bf16 %v1649_v15, %v1648_v55  ;;  %v1908_v55 = vld [vmem:[%s3261_s24 + $0x135] sm:$0xff]  ;;  %v1909_v15 = vld [vmem:[%s3261_s24 + $0x13d] sm:$0xff] }
 0x269   : > { %v2100_v30 = vadd.f32 %v3967_v57, %v1846_v9  ;;  %v1593_v54 = vadd.f32 %v1516_v1, %v3732_v37  ;;  %v1925_v37 = vpack.c.bf16 %v1905_v51, %v1904_v24  ;;  %v2156_v1 = vld [vmem:[%s3261_s24 + $0x106] sm:$0xff] }
 0x26b   : > { %v2278_v8 = vpop.f32.mrf.mxu0  ;;  %v2354_v20 = vadd.f32 %v2276_v34, %v2100_v30  ;;  %v2157_v30 = vld [vmem:[%s3261_s24 + $0x10e] sm:$0xff] }
 0x26c   : > { %v2178_v10 = vpack.c.bf16 %v2157_v30, %v2156_v1 }
 0x26d   : > { %v2394_v38 = vadd.f32 %v3928_v45, %v2354_v20 }
 0x26e   : > { %v1770_v36 = vpop.f32.mrf.mxu2 }
 0x26f   : > { %2430 = vst [vmem:[%s3938_s19 + $0x40] sm:$0xff] %v2394_v38  ;;  %v1847_v2 = vadd.f32 %v1770_v36, %v1593_v54  ;;  %v1906_v38 = vld [vmem:[%s3261_s24 + $0x125] sm:$0xff]  ;;  %v1907_v54 = vld [vmem:[%s3261_s24 + $0x12d] sm:$0xff] }
 0x270   : > { %v1519_v57 = vpop.f32.mrf.mxu1  ;;  %v4015_v49 = vpop.f32.mrf.mxu3 }
 0x271   : > { %v2101_v18 = vadd.f32 %v3979_v26, %v1847_v2  ;;  %v1594_v21 = vadd.f32 %v1519_v57, %v3739_v5 }
 0x273   : > { %v2281_v61 = vpop.f32.mrf.mxu0  ;;  %v2355_v56 = vadd.f32 %v2278_v8, %v2101_v18  ;;  %1558 = vmatmul.bf16.gmra.mxu1 %v1668_v17  ;;  %1812 = vmatmul.bf16.gmra.mxu2 %v1669_v6 }
 0x275   : > { %v2395_v48 = vadd.f32 %v3928_v45, %v2355_v56  ;;  %2076 = vmatmul.bf16.gmra.mxu3 %v1925_v37  ;;  %v1650_v37 = vld [vmem:[%s3261_s24 + $0x114] sm:$0xff] }
 0x276   : > { %2320 = vmatmul.bf16.gmra.mxu0 %v2177_v47  ;;  %v1773_v12 = vpop.f32.mrf.mxu2 }
 0x277   : > { %2431 = vst [vmem:[%s3938_s19 + $0x48] sm:$0xff] %v2395_v48  ;;  %v1848_v26 = vadd.f32 %v1773_v12, %v1594_v21  ;;  %v1651_v48 = vld [vmem:[%s3261_s24 + $0x11c] sm:$0xff] }
 0x278   : > { %v1521_v34 = vpop.f32.mrf.mxu1  ;;  %v4021_v29 = vpop.f32.mrf.mxu3 }
 0x279   : > { %v2102_v0 = vadd.f32 %v3985_v32, %v1848_v26  ;;  %v1595_v5 = vadd.f32 %v1521_v34, %v3760_v39  ;;  %v1926_v39 = vpack.c.bf16 %v1907_v54, %v1906_v38  ;;  %v2159_v26 = vld [vmem:[%s3261_s24 + $0x11e] sm:$0xff] }
 0x27b   : > { %v2283_v17 = vpop.f32.mrf.mxu0  ;;  %v2356_v52 = vadd.f32 %v2281_v61, %v2102_v0 }
 0x27d   : > { %v2396_v9 = vadd.f32 %v3928_v45, %v2356_v52 }
 0x27e   : > { %v1775_v8 = vpop.f32.mrf.mxu2 }
 0x27f   : > { %2432 = vst [vmem:[%s3938_s19 + $0x50] sm:$0xff] %v2396_v9  ;;  %v1849_v20 = vadd.f32 %v1775_v8, %v1595_v5 }
 0x280   : > { %v1524_v32 = vpop.f32.mrf.mxu1  ;;  %v2039_v36 = vpop.f32.mrf.mxu3 }
 0x281   : > { %v2103_v60 = vadd.f32 %v3997_v44, %v1849_v20  ;;  %v1596_v47 = vadd.f32 %v1524_v32, %v3767_v35  ;;  %v2158_v35 = vld [vmem:[%s3261_s24 + $0x116] sm:$0xff] }
 0x283   : > { %v2286_v19 = vpop.f32.mrf.mxu0  ;;  %v2357_v2 = vadd.f32 %v2283_v17, %v2103_v60  ;;  %1563 = vmatmul.bf16.gmra.mxu1 %v1669_v6  ;;  %1817 = vmatmul.bf16.gmra.mxu2 %v1670_v53  ;;  %v1671_v17 = vpack.c.bf16 %v1651_v48, %v1650_v37 }
 0x285   : > { %v2397_v57 = vadd.f32 %v3928_v45, %v2357_v2  ;;  %2081 = vmatmul.bf16.gmra.mxu3 %v1926_v39  ;;  %v1653_v2 = vld [vmem:[%s3261_s24 + $0x12c] sm:$0xff] }
 0x286   : > { %2325 = vmatmul.bf16.gmra.mxu0 %v2178_v10  ;;  %v1778_v24 = vpop.f32.mrf.mxu2 }
 0x287   : > { %2433 = vst [vmem:[%s3938_s19 + $0x58] sm:$0xff] %v2397_v57  ;;  %v1850_v51 = vadd.f32 %v1778_v24, %v1596_v47  ;;  %v2160_v47 = vld [vmem:[%s3261_s24 + $0x126] sm:$0xff]  ;;  %v2161_v24 = vld [vmem:[%s3261_s24 + $0x12e] sm:$0xff] }
 0x288   : > { %v1526_v44 = vpop.f32.mrf.mxu1  ;;  %v2042_v61 = vpop.f32.mrf.mxu3 }
 0x289   : > { %v2104_v18 = vadd.f32 %v4003_v46, %v1850_v51  ;;  %v1597_v12 = vadd.f32 %v1526_v44, %v3778_v22  ;;  %v2179_v46 = vpack.c.bf16 %v2159_v26, %v2158_v35  ;;  %v1927_v22 = vpack.c.bf16 %v1909_v15, %v1908_v55  ;;  %v1655_v55 = vld [vmem:[%s3261_s24 + $0x13c] sm:$0xff] }
 0x28b   : > { %v2288_v6 = vpop.f32.mrf.mxu0  ;;  %v2358_v56 = vadd.f32 %v2286_v19, %v2104_v18  ;;  %v1652_v19 = vld [vmem:[%s3261_s24 + $0x124] sm:$0xff] }
 0x28c   : > { %v1672_v44 = vpack.c.bf16 %v1653_v2, %v1652_v19 }
 0x28d   : > { %v2398_v21 = vadd.f32 %v3928_v45, %v2358_v56 }
 0x28e   : > { %v1780_v34 = vpop.f32.mrf.mxu2 }
 0x28f   : > { %2434 = vst [vmem:[%s3938_s19 + $0x60] sm:$0xff] %v2398_v21  ;;  %v1851_v0 = vadd.f32 %v1780_v34, %v1597_v12 }
 0x290   : > { %v1529_v52 = vpop.f32.mrf.mxu1  ;;  %v2044_v1 = vpop.f32.mrf.mxu3 }
 0x291   : > { %v2105_v9 = vadd.f32 %v4015_v49, %v1851_v0  ;;  %v1598_v20 = vadd.f32 %v1529_v52, %v3782_v11 }
 0x293   : > { %v2291_v5 = vpop.f32.mrf.mxu0  ;;  %v2359_v30 = vadd.f32 %v2288_v6, %v2105_v9  ;;  %1568 = vmatmul.bf16.gmra.mxu1 %v1670_v53  ;;  %1822 = vmatmul.bf16.gmra.mxu2 %v1671_v17  ;;  %v2180_v6 = vpack.c.bf16 %v2161_v24, %v2160_v47  ;;  %v2162_v9 = vld [vmem:[%s3261_s24 + $0x136] sm:$0xff] }
 0x295   : > { %v2399_v8 = vadd.f32 %v3928_v45, %v2359_v30  ;;  %2086 = vmatmul.bf16.gmra.mxu3 %v1927_v22 }
 0x296   : > { %2330 = vmatmul.bf16.gmra.mxu0 %v2179_v46  ;;  %v1783_v32 = vpop.f32.mrf.mxu2  ;;  %v1654_v46 = vld [vmem:[%s3261_s24 + $0x134] sm:$0xff] }
 0x297   : > { %2435 = vst [vmem:[%s3938_s19 + $0x68] sm:$0xff] %v2399_v8  ;;  %v1852_v10 = vadd.f32 %v1783_v32, %v1598_v20  ;;  %v1673_v22 = vpack.c.bf16 %v1655_v55, %v1654_v46 }
 0x298   : > { %v1531_v49 = vpop.f32.mrf.mxu1  ;;  %v2047_v53 = vpop.f32.mrf.mxu3 }
 0x299   : > { %v2106_v38 = vadd.f32 %v4021_v29, %v1852_v10  ;;  %v1599_v57 = vadd.f32 %v1531_v49, %v3792_v63 }
 0x29b   : > { %v2293_v54 = vpop.f32.mrf.mxu0  ;;  %v2360_v60 = vadd.f32 %v2291_v5, %v2106_v38  ;;  %v2163_v5 = vld [vmem:[%s3261_s24 + $0x13e] sm:$0xff]  ;;  %s3058_s24 = smul.u32 288, %s3208_s16  ;;  %s2459_s16 = scalar_lea.sflag [#allocation3], %s161_s9 }
 0x29c   : > { %v2181_v20 = vpack.c.bf16 %v2163_v5, %v2162_v9 }
 0x29d   : > { %v2400_v39 = vadd.f32 %v3928_v45, %v2360_v60  ;;  %s2470_s26 = scalar_lea.hbm %s4161_s3, %s3058_s24 }
 0x29e   : > { %v1785_v11 = vpop.f32.mrf.mxu2  ;;  %s2473_s28 = sshll.u32 %s2470_s26, 4  ;;  %s2474_s28 = int_to_ptr.hbm [resolvable:$true] %s2473_s28 }
 0x29f   : > { %2436 = vst [vmem:[%s3938_s19 + $0x70] sm:$0xff] %v2400_v39  ;;  %v1853_v51 = vadd.f32 %v1785_v11, %v1599_v57  ;;  %s3115_s29 = sshra.s32 %s2474_s28, 4  ;;  %s3116_s29 = int_to_ptr.hbm [resolvable:$true] %s3115_s29 }
 0x2a0   : > { %v1534_v18 = vpop.f32.mrf.mxu1  ;;  %v2049_v37 = vpop.f32.mrf.mxu3  ;;  %s3117_s30 = scalar_lea.hbm %s3116_s29, 288  ;;  %p3122_p0 = scmp.lt.s32.totalorder %s3116_s29, %s4161_s3 }
 0x2a1   : > { %v2107_v56 = vadd.f32 %v2039_v36, %v1853_v51  ;;  %v1600_v21 = vadd.f32 %v1534_v18, %v3795_v27  ;;  %p3118_p11 = scmp.ne.s32.totalorder %s3116_s29, %s3117_s30  ;;  %p3123_p1 = scmp.lt.s32.totalorder %s3121_s6, %s3117_s30 }
 0x2a3   : > { %v2296_v29 = vpop.f32.mrf.mxu0  ;;  %v2361_v48 = vadd.f32 %v2293_v54, %v2107_v56  ;;  %1573 = vmatmul.bf16.gmra.mxu1 %v1671_v17  ;;  %1827 = vmatmul.bf16.gmra.mxu2 %v1672_v44  ;;  %p3119_p12 = pnand %p3118_p11, %p3225_p5  ;;  %p3124_p2 = por %p3123_p1, %p3122_p0 }
 0x2a5   : > { %v2401_v63 = vadd.f32 %v3928_v45, %v2361_v48  ;;  %p3120_p13 = pneg %p3119_p12 }
 0x2a6   : > { %2335 = vmatmul.bf16.gmra.mxu0 %v2180_v6  ;;  %v1788_v12 = vpop.f32.mrf.mxu2 }
 0x2a7   : > { %2437 = vst [vmem:[%s3938_s19 + $0x78] sm:$0xff] %v2401_v63  ;;  %v1854_v35 = vadd.f32 %v1788_v12, %v1600_v21  ;;  %p3125_p3 = pnand %p3124_p2, %p3120_p13 }
 0x2a8   : > { %v1536_v26 = vpop.f32.mrf.mxu1  ;;  %v2052_v0 = vpop.f32.mrf.mxu3 }
 0x2a9   : > { %v2108_v36 = vadd.f32 %v2042_v61, %v1854_v35  ;;  %v1601_v15 = vadd.f32 %v1536_v26, %v3805_v43 }
 0x2ab   : > { %v2298_v34 = vpop.f32.mrf.mxu0  ;;  %v2362_v52 = vadd.f32 %v2296_v29, %v2108_v36 }
 0x2ad   : > { %v2402_v17 = vadd.f32 %v3928_v45, %v2362_v52 }
 0x2ae   : > { %v1790_v30 = vpop.f32.mrf.mxu2 }
 0x2af   : > { %2438 = vst [vmem:[%s3938_s19 + $0x80] sm:$0xff] %v2402_v17  ;;  %v1855_v27 = vadd.f32 %v1790_v30, %v1601_v15 }
 0x2b0   : > { %v1539_v8 = vpop.f32.mrf.mxu1  ;;  %v2054_v49 = vpop.f32.mrf.mxu3 }
 0x2b1   : > { %v2109_v32 = vadd.f32 %v2044_v1, %v1855_v27  ;;  %v1602_v43 = vadd.f32 %v1539_v8, %v3809_v13 }
 0x2b3   : > { %v2301_v61 = vpop.f32.mrf.mxu0  ;;  %v2363_v10 = vadd.f32 %v2298_v34, %v2109_v32  ;;  %1578 = vmatmul.bf16.gmra.mxu1 %v1672_v44  ;;  %1832 = vmatmul.bf16.gmra.mxu2 %v1673_v22 }
 0x2b5   : > { %v2403_v38 = vadd.f32 %v3928_v45, %v2363_v10 }
 0x2b6   : > { %2340 = vmatmul.bf16.gmra.mxu0 %v2181_v20  ;;  %v1793_v54 = vpop.f32.mrf.mxu2 }
 0x2b7   : > { %2439 = vst [vmem:[%s3938_s19 + $0x88] sm:$0xff] %v2403_v38  ;;  %v1856_v60 = vadd.f32 %v1793_v54, %v1602_v43 }
 0x2b8   : > { %v1541_v19 = vpop.f32.mrf.mxu1  ;;  %v2057_v11 = vpop.f32.mrf.mxu3 }
 0x2b9   : > { %v2110_v2 = vadd.f32 %v2047_v53, %v1856_v60  ;;  %v1603_v47 = vadd.f32 %v1541_v19, %v3819_v41 }
 0x2bb   : > { %v2303_v39 = vpop.f32.mrf.mxu0  ;;  %v2364_v57 = vadd.f32 %v2301_v61, %v2110_v2 }
 0x2bd   : > { %v2404_v1 = vadd.f32 %v3928_v45, %v2364_v57 }
 0x2be   : > { %v1795_v24 = vpop.f32.mrf.mxu2 }
 0x2bf   : > { %2440 = vst [vmem:[%s3938_s19 + $0x90] sm:$0xff] %v2404_v1  ;;  %v1857_v51 = vadd.f32 %v1795_v24, %v1603_v47 }
 0x2c0   : > { %v1544_v44 = vpop.f32.mrf.mxu1  ;;  %v2059_v21 = vpop.f32.mrf.mxu3 }
 0x2c1   : > { %v2111_v18 = vadd.f32 %v2049_v37, %v1857_v51  ;;  %v1604_v53 = vadd.f32 %v1544_v44, %v3822_v3 }
 0x2c3   : > { %v2306_v13 = vpop.f32.mrf.mxu0  ;;  %v2365_v6 = vadd.f32 %v2303_v39, %v2111_v18 }
 0x2c5   : > { %v2405_v56 = vadd.f32 %v3928_v45, %v2365_v6 }
 0x2c6   : > { %v1798_v29 = vpop.f32.mrf.mxu2 }
 0x2c7   : > { %2441 = vst [vmem:[%s3938_s19 + $0x98] sm:$0xff] %v2405_v56  ;;  %v1858_v48 = vadd.f32 %v1798_v29, %v1604_v53 }
 0x2c8   : > { %v1546_v63 = vpop.f32.mrf.mxu1  ;;  %v2062_v3 = vpop.f32.mrf.mxu3 }
 0x2c9   : > { %v2112_v12 = vadd.f32 %v2052_v0, %v1858_v48  ;;  %v1605_v37 = vadd.f32 %v1546_v63, %v3831_v33 }
 0x2cb   : > { %v2308_v41 = vpop.f32.mrf.mxu0  ;;  %v2366_v35 = vadd.f32 %v2306_v13, %v2112_v12 }
 0x2cd   : > { %v2406_v26 = vadd.f32 %v3928_v45, %v2366_v35 }
 0x2ce   : > { %v1800_v36 = vpop.f32.mrf.mxu2 }
 0x2cf   : > { %2442 = vst [vmem:[%s3938_s19 + $0xa0] sm:$0xff] %v2406_v26  ;;  %v1859_v34 = vadd.f32 %v1800_v36, %v1605_v37 }
 0x2d0   : > { %v1549_v52 = vpop.f32.mrf.mxu1  ;;  %v2064_v8 = vpop.f32.mrf.mxu3 }
 0x2d1   : > { %v2113_v46 = vadd.f32 %v2054_v49, %v1859_v34  ;;  %v1606_v0 = vadd.f32 %v1549_v52, %v3834_v23 }
 0x2d3   : > { %v2311_v55 = vpop.f32.mrf.mxu0  ;;  %v2367_v17 = vadd.f32 %v2308_v41, %v2113_v46 }
 0x2d5   : > { %v2407_v15 = vadd.f32 %v3928_v45, %v2367_v17 }
 0x2d6   : > { %v1803_v9 = vpop.f32.mrf.mxu2 }
 0x2d7   : > { %2443 = vst [vmem:[%s3938_s19 + $0xa8] sm:$0xff] %v2407_v15  ;;  %v1860_v5 = vadd.f32 %v1803_v9, %v1606_v0 }
 0x2d8   : > { %v1551_v30 = vpop.f32.mrf.mxu1  ;;  %v2067_v2 = vpop.f32.mrf.mxu3 }
 0x2d9   : > { %v2114_v27 = vadd.f32 %v2057_v11, %v1860_v5  ;;  %v1607_v32 = vadd.f32 %v1551_v30, %v3843_v50 }
 0x2db   : > { %v2313_v22 = vpop.f32.mrf.mxu0  ;;  %v2368_v33 = vadd.f32 %v2311_v55, %v2114_v27 }
 0x2dd   : > { %v2408_v20 = vadd.f32 %v3928_v45, %v2368_v33 }
 0x2de   : > { %v1805_v61 = vpop.f32.mrf.mxu2 }
 0x2df   : > { %2444 = vst [vmem:[%s3938_s19 + $0xb0] sm:$0xff] %v2408_v20  ;;  %v1861_v10 = vadd.f32 %v1805_v61, %v1607_v32 }
 0x2e0   : > { %v1554_v49 = vpop.f32.mrf.mxu1  ;;  %v2069_v13 = vpop.f32.mrf.mxu3 }
 0x2e1   : > { %v2115_v38 = vadd.f32 %v2059_v21, %v1861_v10  ;;  %v1608_v60 = vadd.f32 %v1554_v49, %v3846_v58 }
 0x2e3   : > { %v2316_v23 = vpop.f32.mrf.mxu0  ;;  %v2369_v43 = vadd.f32 %v2313_v22, %v2115_v38 }
 0x2e5   : > { %v2409_v54 = vadd.f32 %v3928_v45, %v2369_v43 }
 0x2e6   : > { %v1808_v19 = vpop.f32.mrf.mxu2 }
 0x2e7   : > { %2445 = vst [vmem:[%s3938_s19 + $0xb8] sm:$0xff] %v2409_v54  ;;  %v1862_v39 = vadd.f32 %v1808_v19, %v1608_v60 }
 0x2e8   : > { %v1556_v57 = vpop.f32.mrf.mxu1 }
 0x2e9   : > { %v2116_v1 = vadd.f32 %v2062_v3, %v1862_v39  ;;  %v1609_v11 = vadd.f32 %v1556_v57, %v3855_v7  ;;  %v2072_v7 = vpop.f32.mrf.mxu3 }
 0x2eb   : > { %v2318_v50 = vpop.f32.mrf.mxu0  ;;  %v2370_v47 = vadd.f32 %v2316_v23, %v2116_v1 }
 0x2ed   : > { %v2410_v24 = vadd.f32 %v3928_v45, %v2370_v47 }
 0x2ee   : > { %v1810_v51 = vpop.f32.mrf.mxu2 }
 0x2ef   : > { %2446 = vst [vmem:[%s3938_s19 + $0xc0] sm:$0xff] %v2410_v24  ;;  %v1863_v44 = vadd.f32 %v1810_v51, %v1609_v11 }
 0x2f0   : > { %v1559_v18 = vpop.f32.mrf.mxu1 }
 0x2f1   : > { %v2117_v6 = vadd.f32 %v2064_v8, %v1863_v44  ;;  %v1610_v29 = vadd.f32 %v1559_v18, %v3858_v25  ;;  %v2074_v3 = vpop.f32.mrf.mxu3 }
 0x2f3   : > { %v2321_v58 = vpop.f32.mrf.mxu0  ;;  %v2371_v56 = vadd.f32 %v2318_v50, %v2117_v6 }
 0x2f5   : > { %v2411_v53 = vadd.f32 %v3928_v45, %v2371_v56 }
 0x2f6   : > { %v1813_v48 = vpop.f32.mrf.mxu2 }
 0x2f7   : > { %2447 = vst [vmem:[%s3938_s19 + $0xc8] sm:$0xff] %v2411_v53  ;;  %v1864_v63 = vadd.f32 %v1813_v48, %v1610_v29 }
 0x2f8   : > { %v1561_v21 = vpop.f32.mrf.mxu1 }
 0x2f9   : > { %v2118_v12 = vadd.f32 %v2067_v2, %v1864_v63  ;;  %v1611_v37 = vadd.f32 %v1561_v21, %v3867_v31  ;;  %v2077_v20 = vpop.f32.mrf.mxu3 }
 0x2fb   : > { %v2323_v41 = vpop.f32.mrf.mxu0  ;;  %v2372_v35 = vadd.f32 %v2321_v58, %v2118_v12 }
 0x2fd   : > { %v2412_v26 = vadd.f32 %v3928_v45, %v2372_v35 }
 0x2fe   : > { %v1815_v36 = vpop.f32.mrf.mxu2 }
 0x2ff   : > { %2448 = vst [vmem:[%s3938_s19 + $0xd0] sm:$0xff] %v2412_v26  ;;  %v1865_v34 = vadd.f32 %v1815_v36, %v1611_v37 }
 0x300   : > { %v1564_v52 = vpop.f32.mrf.mxu1 }
 0x301   : > { %v2119_v46 = vadd.f32 %v2069_v13, %v1865_v34  ;;  %v1612_v15 = vadd.f32 %v1564_v52, %v3870_v42  ;;  %v2079_v19 = vpop.f32.mrf.mxu3 }
 0x303   : > { %v2326_v55 = vpop.f32.mrf.mxu0  ;;  %v2373_v25 = vadd.f32 %v2323_v41, %v2119_v46 }
 0x305   : > { %v2413_v17 = vadd.f32 %v3928_v45, %v2373_v25 }
 0x306   : > { %v1818_v0 = vpop.f32.mrf.mxu2 }
 0x307   : > { %2449 = vst [vmem:[%s3938_s19 + $0xd8] sm:$0xff] %v2413_v17  ;;  %v1866_v9 = vadd.f32 %v1818_v0, %v1612_v15 }
 0x308   : > { %v1566_v5 = vpop.f32.mrf.mxu1 }
 0x309   : > { %v2120_v30 = vadd.f32 %v2072_v7, %v1866_v9  ;;  %v1613_v33 = vadd.f32 %v1566_v5, %v3879_v4  ;;  %v2082_v51 = vpop.f32.mrf.mxu3 }
 0x30b   : > { %v2328_v31 = vpop.f32.mrf.mxu0  ;;  %v2374_v27 = vadd.f32 %v2326_v55, %v2120_v30 }
 0x30d   : > { %v2414_v22 = vadd.f32 %v3928_v45, %v2374_v27 }
 0x30e   : > { %v1820_v8 = vpop.f32.mrf.mxu2 }
 0x30f   : > { %2450 = vst [vmem:[%s3938_s19 + $0xe0] sm:$0xff] %v2414_v22  ;;  %v1867_v32 = vadd.f32 %v1820_v8, %v1613_v33 }
 0x310   : > { %v1569_v61 = vpop.f32.mrf.mxu1 }
 0x311   : > { %v2121_v10 = vadd.f32 %v2074_v3, %v1867_v32  ;;  %v1614_v23 = vadd.f32 %v1569_v61, %v3882_v62  ;;  %v2084_v29 = vpop.f32.mrf.mxu3 }
 0x313   : > { %v2331_v42 = vpop.f32.mrf.mxu0  ;;  %v2375_v49 = vadd.f32 %v2328_v31, %v2121_v10 }
 0x315   : > { %v2415_v38 = vadd.f32 %v3928_v45, %v2375_v49 }
 0x316   : > { %v1823_v43 = vpop.f32.mrf.mxu2 }
 0x317   : > { %2451 = vst [vmem:[%s3938_s19 + $0xe8] sm:$0xff] %v2415_v38  ;;  %v1868_v54 = vadd.f32 %v1823_v43, %v1614_v23 }
 0x318   : > { %v1571_v60 = vpop.f32.mrf.mxu1 }
 0x319   : > { %v2122_v2 = vadd.f32 %v2077_v20, %v1868_v54  ;;  %v1615_v1 = vadd.f32 %v1571_v60, %v3891_v40  ;;  %v2087_v36 = vpop.f32.mrf.mxu3 }
 0x31b   : > { %v2333_v4 = vpop.f32.mrf.mxu0  ;;  %v2376_v39 = vadd.f32 %v2331_v42, %v2122_v2 }
 0x31d   : > { %v2416_v57 = vadd.f32 %v3928_v45, %v2376_v39 }
 0x31e   : > { %v1825_v50 = vpop.f32.mrf.mxu2 }
 0x31f   : > { %2452 = vst [vmem:[%s3938_s19 + $0xf0] sm:$0xff] %v2416_v57  ;;  %v1869_v47 = vadd.f32 %v1825_v50, %v1615_v1 }
 0x320   : > { %v1574_v24 = vpop.f32.mrf.mxu1 }
 0x321   : > { %v2123_v11 = vadd.f32 %v2079_v19, %v1869_v47  ;;  %v1616_v13 = vadd.f32 %v1574_v24, %v3894_v16  ;;  %v2089_v0 = vpop.f32.mrf.mxu3 }
 0x323   : > { %v2377_v62 = vadd.f32 %v2333_v4, %v2123_v11  ;;  %v2336_v44 = vpop.f32.mrf.mxu0 }
 0x325   : > { %v2417_v18 = vadd.f32 %v3928_v45, %v2377_v62 }
 0x326   : > { %v1828_v6 = vpop.f32.mrf.mxu2 }
 0x327   : > { %2453 = vst [vmem:[%s3938_s19 + $0xf8] sm:$0xff] %v2417_v18  ;;  %v1870_v58 = vadd.f32 %v1828_v6, %v1616_v13 }
 0x328   : > { %v1576_v56 = vpop.f32.mrf.mxu1 }
 0x329   : > { %v2124_v53 = vadd.f32 %v2082_v51, %v1870_v58  ;;  %v1617_v63 = vadd.f32 %v1576_v56, %v3903_v59 }
 0x32b   : > { %v2378_v40 = vadd.f32 %v2336_v44, %v2124_v53  ;;  %v2338_v21 = vpop.f32.mrf.mxu0 }
 0x32d   : > { %v2418_v48 = vadd.f32 %v3928_v45, %v2378_v40 }
 0x32e   : > { %v1830_v12 = vpop.f32.mrf.mxu2 }
 0x32f   : > { %2454 = vst [vmem:[%s3938_s19 + $0x100] sm:$0xff] %v2418_v48  ;;  %v1871_v41 = vadd.f32 %v1830_v12, %v1617_v63 }
 0x330   : > { %v1579_v7 = vpop.f32.mrf.mxu1 }
 0x331   : > { %v2125_v35 = vadd.f32 %v2084_v29, %v1871_v41  ;;  %v1618_v37 = vadd.f32 %v1579_v7, %v3908_v28 }
 0x333   : > { %v2379_v16 = vadd.f32 %v2338_v21, %v2125_v35  ;;  %v2341_v46 = vpop.f32.mrf.mxu0 }
 0x335   : > { %v2419_v26 = vadd.f32 %v3928_v45, %v2379_v16 }
 0x336   : > { %v1833_v34 = vpop.f32.mrf.mxu2 }
 0x337   : > { %2455 = vst [vmem:[%s3938_s19 + $0x108] sm:$0xff] %v2419_v26  ;;  %v1872_v52 = vadd.f32 %v1833_v34, %v1618_v37 }
 0x338   : > { %v1581_v55 = vpop.f32.mrf.mxu1 }
 0x339   : > { %v2126_v59 = vadd.f32 %v2087_v36, %v1872_v52  ;;  %v1619_v17 = vadd.f32 %v1581_v55, %v3919_v14 }
 0x33b   : > { %v2380_v25 = vadd.f32 %v2341_v46, %v2126_v59  ;;  %v2343_v5 = vpop.f32.mrf.mxu0 }
 0x33d   : > { %v2420_v3 = vadd.f32 %v3928_v45, %v2380_v25 }
 0x33e   : > { %v1835_v15 = vpop.f32.mrf.mxu2 }
 0x33f   : > { %2456 = vst [vmem:[%s3938_s19 + $0x110] sm:$0xff] %v2420_v3  ;;  %v1873_v28 = vadd.f32 %v1835_v15, %v1619_v17 }
 0x341   : > { %v2127_v9 = vadd.f32 %v2089_v0, %v1873_v28 }
 0x343   : > { %v2381_v30 = vadd.f32 %v2343_v5, %v2127_v9 }
 0x345   : > { %v2421_v31 = vadd.f32 %v3928_v45, %v2381_v30 }
 0x347   : > { %2457 = vst [vmem:[%s3938_s19 + $0x118] sm:$0xff] %v2421_v31 }
 0x348   : > { %3128 = shalt.err (!%p3125_p3)
}
 0x349   : > { %s3165_s9 = smov 128   ;;  %s3166_s10 = smov 8  }
 0x34a   : > { %3059 = dma.vmem_to_hbm [thread:$0]  (%p3225_p5), %s2472_s27, 4608, %s2474_s28, %s2459_s16, %s3165_s9, %s3165_s9, %s3166_s10  }
 0x34b PF: > { %p3065_p4 = scmp.ge.s32.totalorder %s3163_s15, 2  ;;  %s2488_s11 = sand.u32 1, %s3151_s12  }
 0x34c   : > { %s2489_s17 = scalar_lea.sflag [#allocation3], %s2488_s11 }
 0x34d   : > { %p3062_p7 = pnand %p3065_p4, %p3229_p6 }
 0x34f   : > { %p3063_p8 = pneg %p3062_p7 }
 0x351   : > { %3146 = dma.done.wait (%p3063_p8), %s2489_s17, 4608  }
 0x352   : > { %3148 = vsyncadd (%p3063_p8), %s2489_s17, 4294962688  ;;  %p13_p9 = scmp.ge.s32.totalorder %s3212_s18, 4   ;;  %s4164_s12 = smov %s3155_s13 }
 0x353   : > { %s4165_s13 = smov %s3159_s14  ;;  %s4166_s14 = smov %s3223_s21 }
 0x354   : > { %s4167_s15 = smov %s3212_s18  ;;  %15 = sbr.rel (!%p13_p9) target bundleno = 3 (0x3), region = 75 }
 0x359   :  { %2495 = vsyncpa [#allocation3], 1 }
 0x35a   :  { %2497 = vsyncpa [#allocation3 + $0x1], 1 }

</bundles_post_ra>
